<compile_context>
chip_gen: v6e
topology: v6e:2x2x1
jax: 0.10.0
libtpu: 0.0.40
codegen_flags: <defaults>
</compile_context>

<pallas_src>
import functools
import numpy as np
import jax
import jax.numpy as jnp
from jax.experimental import pallas as pl
from jax.experimental.pallas import tpu as pltpu

# ---------------- configuration (matches Mel.__init__ defaults) --------------
SAMPLE_RATE = 16000
N_FFT = 512
HOP = 256                      # N_FFT == 2 * HOP (used by the framing trick)
N_FREQS_FULL = N_FFT // 2 + 1  # 257
N_FREQS = 256                  # Nyquist bin dropped (its mel weight is ~0)
N_MEL = 64


# ------------------------------ parameter setup ------------------------------
def _hann_window_periodic(n):
    i = np.arange(n, dtype=np.float64)
    return 0.5 - 0.5 * np.cos(2.0 * np.pi * i / n)


def _fused_windowed_dft_basis():
    """(N_FFT, 2*N_FREQS) window-folded [cos | sin] DFT basis (Nyquist dropped)."""
    w = _hann_window_periodic(N_FFT)[:, None]
    n = np.arange(N_FFT, dtype=np.float64)[:, None]
    k = np.arange(N_FREQS, dtype=np.float64)[None, :]
    ang = 2.0 * np.pi * n * k / N_FFT
    basis = np.concatenate([w * np.cos(ang), w * np.sin(ang)], axis=1)
    return basis.astype(np.float32)


def _mel_filterbank(n_mels, n_mels_pad):
    """torchaudio.functional.melscale_fbanks (htk, norm=None), Nyquist row dropped."""
    all_freqs = np.linspace(0.0, SAMPLE_RATE // 2, N_FREQS_FULL)
    f_min, f_max = 0.0, float(SAMPLE_RATE // 2)
    hz2mel = lambda f: 2595.0 * np.log10(1.0 + f / 700.0)
    mel2hz = lambda m: 700.0 * (10.0 ** (m / 2595.0) - 1.0)
    m_pts = np.linspace(hz2mel(f_min), hz2mel(f_max), n_mels + 2)
    f_pts = mel2hz(m_pts)
    slopes = f_pts[None, :] - all_freqs[:, None]          # (n_freqs, n_mels+2)
    down = -slopes[:, :-2] / (f_pts[1:-1] - f_pts[:-2])
    up = slopes[:, 2:] / (f_pts[2:] - f_pts[1:-1])
    fb = np.maximum(0.0, np.minimum(down, up))
    # Nyquist bin has (numerically) zero weight when f_max == sr/2 and norm=None.
    assert np.abs(fb[N_FREQS_FULL - 1]).max() < 1e-6, "Nyquist drop invalid"
    fb_p = np.zeros((N_FREQS, n_mels_pad), dtype=np.float32)
    fb_p[:, :n_mels] = fb[:N_FREQS]
    return fb_p


# --------------------------------- kernel ------------------------------------
def _mel_kernel(frames_ref, basis_ref, fb_ref, out_ref):
    # frames: (TM, 512) bf16 ; basis: (512, 512) f32 ; fb: (256, n_mel_pad) f32
    frames = frames_ref[...].astype(jnp.float32)            # cheap VPU upcast
    ri = jnp.dot(frames, basis_ref[...],
                 preferred_element_type=jnp.float32)        # (TM, 512) = [re | im]
    re = ri[:, :N_FREQS]
    im = ri[:, N_FREQS:]
    spec = jnp.sqrt(re * re + im * im)                      # magnitude (power=1)
    mel = jnp.dot(spec, fb_ref[...],
                  preferred_element_type=jnp.float32)       # (TM, n_mel_pad)
    out_ref[...] = mel                                      # lane-dense, no transpose


# --------------------------------- wrapper ------------------------------------
@functools.partial(jax.jit, static_argnames=("n_mel", "normalise"))
def mel_forward(wav, *, n_mel=N_MEL, normalise=False):
    """wav: (B, T) float32 -> (B, n_mel, n_frames) float32 (PyTorch layout)."""
    B, T = wav.shape
    n_frames = 1 + (T - N_FFT) // HOP
    assert n_frames >= 1, "waveform shorter than one frame"
    n_mel_pad = max(128, -(-n_mel // 128) * 128)

    # hop-aligned framing: frame i = [chunk_i | chunk_{i+1}]  (no gather)
    chunks = wav[:, :(n_frames + 1) * HOP].reshape(B, n_frames + 1, HOP)
    frames = jnp.concatenate([chunks[:, :n_frames], chunks[:, 1:]], axis=-1)

    # flatten batch into the matmul M axis and pad to a full tile
    M = B * n_frames
    frames = frames.reshape(M, N_FFT).astype(jnp.bfloat16)  # halves HBM traffic
    # TM policy: >=2 grid steps for moderate M (v7x megacore), 512 for large M (v5e)
    if M <= 256:
        TM = 128
    elif M > 1024:
        TM = 512
    else:
        TM = 256
    M_pad = -(-M // TM) * TM
    if M_pad > M:
        frames = jnp.pad(frames, ((0, M_pad - M), (0, 0)))

    basis = jnp.asarray(_fused_windowed_dft_basis(), dtype=jnp.float32)
    fb = jnp.asarray(_mel_filterbank(n_mel, n_mel_pad), dtype=jnp.float32)

    flops = 2 * M_pad * N_FFT * (2 * N_FREQS) + 2 * M_pad * N_FREQS * n_mel_pad
    bytes_accessed = (M_pad * N_FFT * 2 + N_FFT * 2 * N_FREQS * 4
                      + N_FREQS * n_mel_pad * 4 + M_pad * n_mel_pad * 4)

    out = pl.pallas_call(
        _mel_kernel,
        out_shape=jax.ShapeDtypeStruct((M_pad, n_mel_pad), jnp.float32),
        grid=(M_pad // TM,),
        in_specs=[
            pl.BlockSpec((TM, N_FFT), lambda m: (m, 0)),           # frame tile
            pl.BlockSpec((N_FFT, 2 * N_FREQS), lambda m: (0, 0),   # fused DFT basis
                         pipeline_mode=pl.Buffered(1)),
            pl.BlockSpec((N_FREQS, n_mel_pad), lambda m: (0, 0),   # mel filterbank
                         pipeline_mode=pl.Buffered(1)),
        ],
        out_specs=pl.BlockSpec((TM, n_mel_pad), lambda m: (m, 0)),
        compiler_params=pltpu.CompilerParams(dimension_semantics=("parallel",)),
        cost_estimate=pl.CostEstimate(flops=flops,
                                      transcendentals=M_pad * N_FREQS,
                                      bytes_accessed=bytes_accessed),
    )(frames, basis, fb)

    # slice padded bins/rows, un-flatten batch, permute to (B, n_mel, n_frames)
    mel = jnp.transpose(out[:M, :n_mel].reshape(B, n_frames, n_mel), (0, 2, 1))

    if normalise:
        # per-utterance mean / unbiased std over time (matches torch.std default)
        mean = jnp.mean(mel, axis=-1, keepdims=True)
        std = jnp.std(mel, axis=-1, keepdims=True, ddof=1)
        mel = (mel - mean) / std
    return mel


# ---------------------------------- main --------------------------------------
if __name__ == "__main__":
    key = jax.random.PRNGKey(0)
    B = 2
    T = N_FFT + 7 * HOP                                   # -> 8 frames
    wav = jax.random.normal(key, (B, T), dtype=jnp.float32)

    feature = jax.block_until_ready(mel_forward(wav, n_mel=N_MEL, normalise=False))
    assert feature.shape == (B, N_MEL, 1 + (T - N_FFT) // HOP)
    assert feature.dtype == jnp.float32
    assert bool(jnp.all(jnp.isfinite(feature)))
    print("KERNEL_OK")
</pallas_src>

<mosaic_0001>
module attributes {stable_mosaic.version = 11 : i64} {
  func.func @_mel_kernel(%arg0: i32, %arg1: memref<128x512xbf16, #tpu.memory_space<vmem>>, %arg2: memref<512x512xf32, #tpu.memory_space<vmem>>, %arg3: memref<256x128xf32, #tpu.memory_space<vmem>>, %arg4: memref<128x128xf32, #tpu.memory_space<vmem>>) attributes {dimension_semantics = [#tpu.dimension_semantics<parallel>], iteration_bounds = array<i64: 1>, scalar_prefetch = 0 : i64, scratch_operands = 0 : i64, tpu.core_type = #tpu.core_type<tc>, window_params = [{transform_indices = @transform_0, window_bounds = array<i64: 128, 512>}, {pipeline_mode = #tpu.pipeline_mode<synchronous>, transform_indices = @transform_1, window_bounds = array<i64: 512, 512>}, {pipeline_mode = #tpu.pipeline_mode<synchronous>, transform_indices = @transform_2, window_bounds = array<i64: 256, 128>}, {transform_indices = @transform_3, window_bounds = array<i64: 128, 128>}]} {
    %c0 = arith.constant 0 : index
    %c0_0 = arith.constant 0 : index
    %0 = vector.load %arg1[%c0, %c0_0] : memref<128x512xbf16, #tpu.memory_space<vmem>>, vector<128x512xbf16>
    %1 = arith.extf %0 : vector<128x512xbf16> to vector<128x512xf32>
    %c0_1 = arith.constant 0 : index
    %c0_2 = arith.constant 0 : index
    %2 = vector.load %arg2[%c0_1, %c0_2] : memref<512x512xf32, #tpu.memory_space<vmem>>, vector<512x512xf32>
    %cst = arith.constant dense<0.000000e+00> : vector<128x512xf32>
    %3 = tpu.matmul %1, %2, %cst {dimension_numbers = #tpu.dot_dimension_numbers<[1], [0], [0], [1], [0, 0, 1, 1], [], []>} : vector<128x512xf32>, vector<512x512xf32>, vector<128x512xf32> -> vector<128x512xf32>
    %4 = vector.extract_strided_slice %3 {offsets = [0, 0], sizes = [128, 256], strides = [1, 1]} : vector<128x512xf32> to vector<128x256xf32>
    %5 = vector.extract_strided_slice %3 {offsets = [0, 256], sizes = [128, 256], strides = [1, 1]} : vector<128x512xf32> to vector<128x256xf32>
    %6 = arith.mulf %4, %4 : vector<128x256xf32>
    %7 = arith.mulf %5, %5 : vector<128x256xf32>
    %8 = arith.addf %6, %7 : vector<128x256xf32>
    %9 = math.sqrt %8 : vector<128x256xf32>
    %c0_3 = arith.constant 0 : index
    %c0_4 = arith.constant 0 : index
    %10 = vector.load %arg3[%c0_3, %c0_4] : memref<256x128xf32, #tpu.memory_space<vmem>>, vector<256x128xf32>
    %cst_5 = arith.constant dense<0.000000e+00> : vector<128x128xf32>
    %11 = tpu.matmul %9, %10, %cst_5 {dimension_numbers = #tpu.dot_dimension_numbers<[1], [0], [0], [1], [0, 0, 1, 1], [], []>} : vector<128x256xf32>, vector<256x128xf32>, vector<128x128xf32> -> vector<128x128xf32>
    %c0_6 = arith.constant 0 : index
    %c0_7 = arith.constant 0 : index
    %12 = vector.load %arg4[%c0_6, %c0_7] : memref<128x128xf32, #tpu.memory_space<vmem>>, vector<128x128xf32>
    tpu.vector_store %arg4[%c0_6, %c0_7], %11 {strides = array<i32>} : memref<128x128xf32, #tpu.memory_space<vmem>>, vector<128x128xf32>,
    return
  }
  func.func @transform_0(%arg0: i32) -> (i32, i32) {
    %c0_i32 = arith.constant 0 : i32
    %c0_i32_0 = arith.constant 0 : i32
    return %arg0, %c0_i32 : i32, i32
  }
  func.func @transform_1(%arg0: i32) -> (i32, i32) {
    %c0_i32 = arith.constant 0 : i32
    %c0_i32_0 = arith.constant 0 : i32
    %c0_i32_1 = arith.constant 0 : i32
    return %c0_i32, %c0_i32_0 : i32, i32
  }
  func.func @transform_2(%arg0: i32) -> (i32, i32) {
    %c0_i32 = arith.constant 0 : i32
    %c0_i32_0 = arith.constant 0 : i32
    %c0_i32_1 = arith.constant 0 : i32
    return %c0_i32, %c0_i32_0 : i32, i32
  }
  func.func @transform_3(%arg0: i32) -> (i32, i32) {
    %c0_i32 = arith.constant 0 : i32
    %c0_i32_0 = arith.constant 0 : i32
    return %arg0, %c0_i32 : i32, i32
  }
}

</mosaic_0001>

<bundles_post_ra>
// kernel: mel_forward.1
= control target key start
LH: loop header
LB: loop body
LE: loop exit
PB: predicated region body
PF: predicated region fallthrough
CT: control target
= control target key end

     0   :  { %8 = vsyncpa [#allocation3], 0  ;;  %s1743_s12 = smov [#allocation2]   ;;  %s2916_s0 = inlined_call_operand.vmem [shape: bf16[128,512], index: 0, kind: input, shape index: {}]   ;;  %s2917_s1 = inlined_call_operand.hbm [shape: f32[512,512], index: 1, kind: input, shape index: {}]   ;;  %s2918_s2 = inlined_call_operand.vmem [shape: f32[256,128], index: 2, kind: input, shape index: {}]   ;;  %s2919_s3 = inlined_call_operand.vmem [shape: f32[128,128], index: 3, kind: output, shape index: {}]  }
   0x1   :  { %s16_s13 = sshll.u32 %s1743_s12, 4  ;;  %s17_s13 = int_to_ptr.vmem [resolvable:$true] %s16_s13 }
   0x2   :  { %s1729_s14 = scalar_lea.vmem %s17_s13, 32768  ;;  %p1734_p1 = scmp.lt.s32.totalorder %s17_s13, %s17_s13 }
   0x3   :  { %p1730_p0 = scmp.ne.s32.totalorder %s17_s13, %s1729_s14  ;;  %p1735_p2 = scmp.lt.s32.totalorder %s1729_s14, %s1729_s14 }
   0x5   :  { %p1736_p3 = por %p1735_p2, %p1734_p1 }
   0x7   :  { %p1737_p4 = pnand %p1736_p3, %p1730_p0 }
   0x9   :  { %1740 = shalt.err (!%p1737_p4)
}
   0xa   :  { %s1744_s15 = smov 512   ;;  %s1745_s16 = smov 32  }
   0xb   :  { %22 = dma.hbm_to_vmem [thread:$0]  %s2917_s1, 32768, %s17_s13, [#allocation3], %s1744_s15, %s1744_s15, %s1745_s16  }
   0xc   :  { %1741 = dma.done.wait [#allocation3], 32768  }
   0xd   :  { %1742 = vsyncadd [#allocation3], 4294934528  ;;  %v185_v0 = vld [vmem:[#allocation2 + $0x1e8] sm:$0xff]  ;;  %v184_v2 = vld [vmem:[#allocation2 + $0x1e0] sm:$0xff] }
   0xe   :  { %v313_v1 = vld [vmem:[#allocation2 + $0x5e8] sm:$0xff]  ;;  %380 = vmatprep.subr.mxu0 %v185_v0  ;;  %v312_v3 = vld [vmem:[#allocation2 + $0x5e0] sm:$0xff] }
   0xf   :  { %541 = vmatprep.subr.mxu1 %v313_v1  ;;  %v181_v4 = vld [vmem:[#allocation2 + $0x1c8] sm:$0xff]  ;;  %381 = vmatpush1.msra.mxu0 %v184_v2  ;;  %v180_v6 = vld [vmem:[#allocation2 + $0x1c0] sm:$0xff] }
  0x10   :  { %v309_v5 = vld [vmem:[#allocation2 + $0x5c8] sm:$0xff]  ;;  %542 = vmatpush1.msra.mxu1 %v312_v3  ;;  %v308_v7 = vld [vmem:[#allocation2 + $0x5c0] sm:$0xff]  ;;  %382 = vmatprep.subr.mxu0 %v181_v4 }
  0x11   :  { %v177_v8 = vld [vmem:[#allocation2 + $0x1a8] sm:$0xff]  ;;  %543 = vmatprep.subr.mxu1 %v309_v5  ;;  %v176_v10 = vld [vmem:[#allocation2 + $0x1a0] sm:$0xff]  ;;  %383 = vmatpush1.msra.mxu0 %v180_v6 }
  0x12   :  { %v305_v9 = vld [vmem:[#allocation2 + $0x5a8] sm:$0xff]  ;;  %v304_v11 = vld [vmem:[#allocation2 + $0x5a0] sm:$0xff]  ;;  %544 = vmatpush1.msra.mxu1 %v308_v7  ;;  %384 = vmatprep.subr.mxu0 %v177_v8 }
  0x13   :  { %v173_v12 = vld [vmem:[#allocation2 + $0x188] sm:$0xff]  ;;  %545 = vmatprep.subr.mxu1 %v305_v9  ;;  %v172_v14 = vld [vmem:[#allocation2 + $0x180] sm:$0xff]  ;;  %385 = vmatpush1.msra.mxu0 %v176_v10 }
  0x14   :  { %v301_v13 = vld [vmem:[#allocation2 + $0x588] sm:$0xff]  ;;  %v300_v15 = vld [vmem:[#allocation2 + $0x580] sm:$0xff]  ;;  %546 = vmatpush1.msra.mxu1 %v304_v11  ;;  %386 = vmatprep.subr.mxu0 %v173_v12 }
  0x15   :  { %v169_v16 = vld [vmem:[#allocation2 + $0x168] sm:$0xff]  ;;  %547 = vmatprep.subr.mxu1 %v301_v13  ;;  %v168_v18 = vld [vmem:[#allocation2 + $0x160] sm:$0xff]  ;;  %387 = vmatpush1.msra.mxu0 %v172_v14 }
  0x16   :  { %v297_v17 = vld [vmem:[#allocation2 + $0x568] sm:$0xff]  ;;  %v296_v19 = vld [vmem:[#allocation2 + $0x560] sm:$0xff]  ;;  %548 = vmatpush1.msra.mxu1 %v300_v15  ;;  %388 = vmatprep.subr.mxu0 %v169_v16 }
  0x17   :  { %v165_v20 = vld [vmem:[#allocation2 + $0x148] sm:$0xff]  ;;  %549 = vmatprep.subr.mxu1 %v297_v17  ;;  %v164_v22 = vld [vmem:[#allocation2 + $0x140] sm:$0xff]  ;;  %389 = vmatpush1.msra.mxu0 %v168_v18 }
  0x18   :  { %v293_v21 = vld [vmem:[#allocation2 + $0x548] sm:$0xff]  ;;  %v292_v23 = vld [vmem:[#allocation2 + $0x540] sm:$0xff]  ;;  %550 = vmatpush1.msra.mxu1 %v296_v19  ;;  %390 = vmatprep.subr.mxu0 %v165_v20 }
  0x19   :  { %v161_v24 = vld [vmem:[#allocation2 + $0x128] sm:$0xff]  ;;  %551 = vmatprep.subr.mxu1 %v293_v21  ;;  %v160_v26 = vld [vmem:[#allocation2 + $0x120] sm:$0xff]  ;;  %391 = vmatpush1.msra.mxu0 %v164_v22 }
  0x1a   :  { %v289_v25 = vld [vmem:[#allocation2 + $0x528] sm:$0xff]  ;;  %v288_v27 = vld [vmem:[#allocation2 + $0x520] sm:$0xff]  ;;  %552 = vmatpush1.msra.mxu1 %v292_v23  ;;  %392 = vmatprep.subr.mxu0 %v161_v24 }
  0x1b   :  { %v157_v28 = vld [vmem:[#allocation2 + $0x108] sm:$0xff]  ;;  %553 = vmatprep.subr.mxu1 %v289_v25  ;;  %v156_v30 = vld [vmem:[#allocation2 + $0x100] sm:$0xff]  ;;  %393 = vmatpush1.msra.mxu0 %v160_v26 }
  0x1c   :  { %v285_v29 = vld [vmem:[#allocation2 + $0x508] sm:$0xff]  ;;  %v284_v31 = vld [vmem:[#allocation2 + $0x500] sm:$0xff]  ;;  %554 = vmatpush1.msra.mxu1 %v288_v27  ;;  %394 = vmatprep.subr.mxu0 %v157_v28 }
  0x1d   :  { %v153_v32 = vld [vmem:[#allocation2 + $0xe8] sm:$0xff]  ;;  %555 = vmatprep.subr.mxu1 %v285_v29  ;;  %v152_v34 = vld [vmem:[#allocation2 + $0xe0] sm:$0xff]  ;;  %395 = vmatpush1.msra.mxu0 %v156_v30 }
  0x1e   :  { %v281_v33 = vld [vmem:[#allocation2 + $0x4e8] sm:$0xff]  ;;  %v280_v35 = vld [vmem:[#allocation2 + $0x4e0] sm:$0xff]  ;;  %556 = vmatpush1.msra.mxu1 %v284_v31  ;;  %396 = vmatprep.subr.mxu0 %v153_v32 }
  0x1f   :  { %v149_v36 = vld [vmem:[#allocation2 + $0xc8] sm:$0xff]  ;;  %557 = vmatprep.subr.mxu1 %v281_v33  ;;  %v148_v38 = vld [vmem:[#allocation2 + $0xc0] sm:$0xff]  ;;  %397 = vmatpush1.msra.mxu0 %v152_v34 }
  0x20   :  { %v277_v37 = vld [vmem:[#allocation2 + $0x4c8] sm:$0xff]  ;;  %v276_v39 = vld [vmem:[#allocation2 + $0x4c0] sm:$0xff]  ;;  %558 = vmatpush1.msra.mxu1 %v280_v35  ;;  %398 = vmatprep.subr.mxu0 %v149_v36 }
  0x21   :  { %v145_v40 = vld [vmem:[#allocation2 + $0xa8] sm:$0xff]  ;;  %559 = vmatprep.subr.mxu1 %v277_v37  ;;  %v144_v42 = vld [vmem:[#allocation2 + $0xa0] sm:$0xff]  ;;  %399 = vmatpush1.msra.mxu0 %v148_v38 }
  0x22   :  { %v273_v41 = vld [vmem:[#allocation2 + $0x4a8] sm:$0xff]  ;;  %v272_v43 = vld [vmem:[#allocation2 + $0x4a0] sm:$0xff]  ;;  %560 = vmatpush1.msra.mxu1 %v276_v39  ;;  %400 = vmatprep.subr.mxu0 %v145_v40 }
  0x23   :  { %v141_v44 = vld [vmem:[#allocation2 + $0x88] sm:$0xff]  ;;  %561 = vmatprep.subr.mxu1 %v273_v41  ;;  %v140_v46 = vld [vmem:[#allocation2 + $0x80] sm:$0xff]  ;;  %401 = vmatpush1.msra.mxu0 %v144_v42 }
  0x24   :  { %v269_v45 = vld [vmem:[#allocation2 + $0x488] sm:$0xff]  ;;  %v268_v47 = vld [vmem:[#allocation2 + $0x480] sm:$0xff]  ;;  %562 = vmatpush1.msra.mxu1 %v272_v43  ;;  %402 = vmatprep.subr.mxu0 %v141_v44 }
  0x25   :  { %v137_v48 = vld [vmem:[#allocation2 + $0x68] sm:$0xff]  ;;  %563 = vmatprep.subr.mxu1 %v269_v45  ;;  %v136_v50 = vld [vmem:[#allocation2 + $0x60] sm:$0xff]  ;;  %403 = vmatpush1.msra.mxu0 %v140_v46 }
  0x26   :  { %v265_v49 = vld [vmem:[#allocation2 + $0x468] sm:$0xff]  ;;  %v264_v51 = vld [vmem:[#allocation2 + $0x460] sm:$0xff]  ;;  %564 = vmatpush1.msra.mxu1 %v268_v47  ;;  %404 = vmatprep.subr.mxu0 %v137_v48 }
  0x27   :  { %v133_v52 = vld [vmem:[#allocation2 + $0x48] sm:$0xff]  ;;  %565 = vmatprep.subr.mxu1 %v265_v49  ;;  %v132_v54 = vld [vmem:[#allocation2 + $0x40] sm:$0xff]  ;;  %405 = vmatpush1.msra.mxu0 %v136_v50 }
  0x28   :  { %v261_v53 = vld [vmem:[#allocation2 + $0x448] sm:$0xff]  ;;  %v260_v55 = vld [vmem:[#allocation2 + $0x440] sm:$0xff]  ;;  %566 = vmatpush1.msra.mxu1 %v264_v51  ;;  %406 = vmatprep.subr.mxu0 %v133_v52 }
  0x29   :  { %v129_v56 = vld [vmem:[#allocation2 + $0x28] sm:$0xff]  ;;  %567 = vmatprep.subr.mxu1 %v261_v53  ;;  %v128_v58 = vld [vmem:[#allocation2 + $0x20] sm:$0xff]  ;;  %407 = vmatpush1.msra.mxu0 %v132_v54 }
  0x2a   :  { %v257_v57 = vld [vmem:[#allocation2 + $0x428] sm:$0xff]  ;;  %v256_v59 = vld [vmem:[#allocation2 + $0x420] sm:$0xff]  ;;  %568 = vmatpush1.msra.mxu1 %v260_v55  ;;  %408 = vmatprep.subr.mxu0 %v129_v56 }
  0x2b   :  { %v125_v60 = vld [vmem:[#allocation2 + $0x8] sm:$0xff]  ;;  %569 = vmatprep.subr.mxu1 %v257_v57  ;;  %v124_v62 = vld [vmem:[#allocation2] sm:$0xff]  ;;  %409 = vmatpush1.msra.mxu0 %v128_v58 }
  0x2c   :  { %v253_v61 = vld [vmem:[#allocation2 + $0x408] sm:$0xff]  ;;  %v252_v63 = vld [vmem:[#allocation2 + $0x400] sm:$0xff]  ;;  %570 = vmatpush1.msra.mxu1 %v256_v59  ;;  %410 = vmatprep.subr.mxu0 %v125_v60 }
  0x2d   :  { %v249_v0 = vld [vmem:[#allocation2 + $0x3e8] sm:$0xff]  ;;  %571 = vmatprep.subr.mxu1 %v253_v61  ;;  %v248_v2 = vld [vmem:[#allocation2 + $0x3e0] sm:$0xff]  ;;  %411 = vmatpush1.msra.mxu0 %v124_v62 }
  0x2e   :  { %v377_v1 = vld [vmem:[#allocation2 + $0x7e8] sm:$0xff]  ;;  %v376_v3 = vld [vmem:[#allocation2 + $0x7e0] sm:$0xff]  ;;  %572 = vmatpush1.msra.mxu1 %v252_v63  ;;  %412 = vmatprep.subr.mxu0 %v249_v0 }
  0x2f   :  { %v245_v4 = vld [vmem:[#allocation2 + $0x3c8] sm:$0xff]  ;;  %573 = vmatprep.subr.mxu1 %v377_v1  ;;  %v244_v6 = vld [vmem:[#allocation2 + $0x3c0] sm:$0xff]  ;;  %413 = vmatpush2.msra.mxu0 %v248_v2 }
  0x30   :  { %v373_v5 = vld [vmem:[#allocation2 + $0x7c8] sm:$0xff]  ;;  %v372_v7 = vld [vmem:[#allocation2 + $0x7c0] sm:$0xff]  ;;  %574 = vmatpush2.msra.mxu1 %v376_v3  ;;  %414 = vmatprep.subr.mxu0 %v245_v4 }
  0x31   :  { %v241_v8 = vld [vmem:[#allocation2 + $0x3a8] sm:$0xff]  ;;  %575 = vmatprep.subr.mxu1 %v373_v5  ;;  %v240_v10 = vld [vmem:[#allocation2 + $0x3a0] sm:$0xff]  ;;  %415 = vmatpush2.msra.mxu0 %v244_v6  ;;  %v1786_v6 = vld [vmem:[%s2916_s0 + $0x10] sm:$0xff] }
  0x32   :  { %v369_v9 = vld [vmem:[#allocation2 + $0x7a8] sm:$0xff]  ;;  %v368_v11 = vld [vmem:[#allocation2 + $0x7a0] sm:$0xff]  ;;  %576 = vmatpush2.msra.mxu1 %v372_v7  ;;  %416 = vmatprep.subr.mxu0 %v241_v8  ;;  %v1791_v7 = vld [vmem:[%s2916_s0 + $0x18] sm:$0xff] }
  0x33   :  { %v237_v12 = vld [vmem:[#allocation2 + $0x388] sm:$0xff]  ;;  %577 = vmatprep.subr.mxu1 %v369_v9  ;;  %v236_v14 = vld [vmem:[#allocation2 + $0x380] sm:$0xff]  ;;  %417 = vmatpush2.msra.mxu0 %v240_v10  ;;  %v187_v8 = vld [vmem:[#allocation2 + $0x1f8] sm:$0xff] }
  0x34   :  { %v365_v13 = vld [vmem:[#allocation2 + $0x788] sm:$0xff]  ;;  %v364_v15 = vld [vmem:[#allocation2 + $0x780] sm:$0xff]  ;;  %578 = vmatpush2.msra.mxu1 %v368_v11  ;;  %418 = vmatprep.subr.mxu0 %v237_v12  ;;  %v315_v9 = vld [vmem:[#allocation2 + $0x5f8] sm:$0xff] }
  0x35   :  { %v233_v16 = vld [vmem:[#allocation2 + $0x368] sm:$0xff]  ;;  %579 = vmatprep.subr.mxu1 %v365_v13  ;;  %v232_v18 = vld [vmem:[#allocation2 + $0x360] sm:$0xff]  ;;  %419 = vmatpush2.msra.mxu0 %v236_v14  ;;  %v186_v10 = vld [vmem:[#allocation2 + $0x1f0] sm:$0xff]  ;;  %v65_v14 = vunpack.c.h.bf16 %v1786_v6 }
  0x36   :  { %v361_v17 = vld [vmem:[#allocation2 + $0x768] sm:$0xff]  ;;  %v360_v19 = vld [vmem:[#allocation2 + $0x760] sm:$0xff]  ;;  %580 = vmatpush2.msra.mxu1 %v364_v15  ;;  %420 = vmatprep.subr.mxu0 %v233_v16  ;;  %v314_v11 = vld [vmem:[#allocation2 + $0x5f0] sm:$0xff]  ;;  %v67_v15 = vunpack.c.h.bf16 %v1791_v7 }
  0x37   :  { %v229_v20 = vld [vmem:[#allocation2 + $0x348] sm:$0xff]  ;;  %581 = vmatprep.subr.mxu1 %v361_v17  ;;  %v228_v22 = vld [vmem:[#allocation2 + $0x340] sm:$0xff]  ;;  %421 = vmatpush2.msra.mxu0 %v232_v18  ;;  %v183_v12 = vld [vmem:[#allocation2 + $0x1d8] sm:$0xff]  ;;  %v64_v18 = vunpack.c.l.bf16 %v1786_v6 }
  0x38   :  { %v357_v21 = vld [vmem:[#allocation2 + $0x748] sm:$0xff]  ;;  %v356_v23 = vld [vmem:[#allocation2 + $0x740] sm:$0xff]  ;;  %582 = vmatpush2.msra.mxu1 %v360_v19  ;;  %422 = vmatprep.subr.mxu0 %v229_v20  ;;  %v311_v13 = vld [vmem:[#allocation2 + $0x5d8] sm:$0xff]  ;;  %v66_v19 = vunpack.c.l.bf16 %v1791_v7 }
  0x39   :  { %v225_v24 = vld [vmem:[#allocation2 + $0x328] sm:$0xff]  ;;  %583 = vmatprep.subr.mxu1 %v357_v21  ;;  %v224_v26 = vld [vmem:[#allocation2 + $0x320] sm:$0xff]  ;;  %423 = vmatpush2.msra.mxu0 %v228_v22  ;;  %v182_v16 = vld [vmem:[#allocation2 + $0x1d0] sm:$0xff] }
  0x3a   :  { %v353_v25 = vld [vmem:[#allocation2 + $0x728] sm:$0xff]  ;;  %v352_v27 = vld [vmem:[#allocation2 + $0x720] sm:$0xff]  ;;  %584 = vmatpush2.msra.mxu1 %v356_v23  ;;  %424 = vmatprep.subr.mxu0 %v225_v24  ;;  %v310_v17 = vld [vmem:[#allocation2 + $0x5d0] sm:$0xff] }
  0x3b   :  { %v221_v28 = vld [vmem:[#allocation2 + $0x308] sm:$0xff]  ;;  %585 = vmatprep.subr.mxu1 %v353_v25  ;;  %v220_v30 = vld [vmem:[#allocation2 + $0x300] sm:$0xff]  ;;  %425 = vmatpush2.msra.mxu0 %v224_v26  ;;  %v179_v22 = vld [vmem:[#allocation2 + $0x1b8] sm:$0xff] }
  0x3c   :  { %v349_v29 = vld [vmem:[#allocation2 + $0x708] sm:$0xff]  ;;  %v348_v31 = vld [vmem:[#allocation2 + $0x700] sm:$0xff]  ;;  %586 = vmatpush2.msra.mxu1 %v352_v27  ;;  %426 = vmatprep.subr.mxu0 %v221_v28  ;;  %v307_v23 = vld [vmem:[#allocation2 + $0x5b8] sm:$0xff] }
  0x3d   :  { %v217_v32 = vld [vmem:[#allocation2 + $0x2e8] sm:$0xff]  ;;  %587 = vmatprep.subr.mxu1 %v349_v29  ;;  %v216_v34 = vld [vmem:[#allocation2 + $0x2e0] sm:$0xff]  ;;  %427 = vmatpush2.msra.mxu0 %v220_v30  ;;  %v178_v24 = vld [vmem:[#allocation2 + $0x1b0] sm:$0xff] }
  0x3e   :  { %v345_v33 = vld [vmem:[#allocation2 + $0x6e8] sm:$0xff]  ;;  %v344_v35 = vld [vmem:[#allocation2 + $0x6e0] sm:$0xff]  ;;  %588 = vmatpush2.msra.mxu1 %v348_v31  ;;  %428 = vmatprep.subr.mxu0 %v217_v32  ;;  %v306_v25 = vld [vmem:[#allocation2 + $0x5b0] sm:$0xff] }
  0x3f   :  { %v213_v36 = vld [vmem:[#allocation2 + $0x2c8] sm:$0xff]  ;;  %589 = vmatprep.subr.mxu1 %v345_v33  ;;  %v212_v38 = vld [vmem:[#allocation2 + $0x2c0] sm:$0xff]  ;;  %429 = vmatpush2.msra.mxu0 %v216_v34  ;;  %v175_v26 = vld [vmem:[#allocation2 + $0x198] sm:$0xff] }
  0x40   :  { %v341_v37 = vld [vmem:[#allocation2 + $0x6c8] sm:$0xff]  ;;  %v340_v39 = vld [vmem:[#allocation2 + $0x6c0] sm:$0xff]  ;;  %590 = vmatpush2.msra.mxu1 %v344_v35  ;;  %430 = vmatprep.subr.mxu0 %v213_v36  ;;  %v303_v27 = vld [vmem:[#allocation2 + $0x598] sm:$0xff] }
  0x41   :  { %v209_v40 = vld [vmem:[#allocation2 + $0x2a8] sm:$0xff]  ;;  %591 = vmatprep.subr.mxu1 %v341_v37  ;;  %v208_v42 = vld [vmem:[#allocation2 + $0x2a0] sm:$0xff]  ;;  %431 = vmatpush2.msra.mxu0 %v212_v38  ;;  %v174_v30 = vld [vmem:[#allocation2 + $0x190] sm:$0xff] }
  0x42   :  { %v337_v41 = vld [vmem:[#allocation2 + $0x6a8] sm:$0xff]  ;;  %v336_v43 = vld [vmem:[#allocation2 + $0x6a0] sm:$0xff]  ;;  %592 = vmatpush2.msra.mxu1 %v340_v39  ;;  %432 = vmatprep.subr.mxu0 %v209_v40  ;;  %v302_v31 = vld [vmem:[#allocation2 + $0x590] sm:$0xff] }
  0x43   :  { %v205_v44 = vld [vmem:[#allocation2 + $0x288] sm:$0xff]  ;;  %593 = vmatprep.subr.mxu1 %v337_v41  ;;  %v204_v46 = vld [vmem:[#allocation2 + $0x280] sm:$0xff]  ;;  %433 = vmatpush2.msra.mxu0 %v208_v42  ;;  %v1830_v34 = vld [vmem:[%s2916_s0 + $0x30] sm:$0xff] }
  0x44   :  { %v333_v45 = vld [vmem:[#allocation2 + $0x688] sm:$0xff]  ;;  %v332_v47 = vld [vmem:[#allocation2 + $0x680] sm:$0xff]  ;;  %594 = vmatpush2.msra.mxu1 %v336_v43  ;;  %434 = vmatprep.subr.mxu0 %v205_v44  ;;  %v1835_v35 = vld [vmem:[%s2916_s0 + $0x38] sm:$0xff]  ;;  %v73_v42 = vunpack.c.h.bf16 %v1830_v34 }
  0x45   :  { %v201_v48 = vld [vmem:[#allocation2 + $0x268] sm:$0xff]  ;;  %595 = vmatprep.subr.mxu1 %v333_v45  ;;  %v200_v50 = vld [vmem:[#allocation2 + $0x260] sm:$0xff]  ;;  %435 = vmatpush2.msra.mxu0 %v204_v46  ;;  %v171_v36 = vld [vmem:[#allocation2 + $0x178] sm:$0xff]  ;;  %v75_v43 = vunpack.c.h.bf16 %v1835_v35  ;;  %v72_v46 = vunpack.c.l.bf16 %v1830_v34 }
  0x46   :  { %v329_v49 = vld [vmem:[#allocation2 + $0x668] sm:$0xff]  ;;  %v328_v51 = vld [vmem:[#allocation2 + $0x660] sm:$0xff]  ;;  %596 = vmatpush2.msra.mxu1 %v332_v47  ;;  %436 = vmatprep.subr.mxu0 %v201_v48  ;;  %v299_v37 = vld [vmem:[#allocation2 + $0x578] sm:$0xff]  ;;  %v74_v47 = vunpack.c.l.bf16 %v1835_v35 }
  0x47   :  { %v197_v52 = vld [vmem:[#allocation2 + $0x248] sm:$0xff]  ;;  %597 = vmatprep.subr.mxu1 %v329_v49  ;;  %v196_v54 = vld [vmem:[#allocation2 + $0x240] sm:$0xff]  ;;  %437 = vmatpush2.msra.mxu0 %v200_v50  ;;  %v170_v38 = vld [vmem:[#allocation2 + $0x170] sm:$0xff] }
  0x48   :  { %v325_v53 = vld [vmem:[#allocation2 + $0x648] sm:$0xff]  ;;  %v324_v55 = vld [vmem:[#allocation2 + $0x640] sm:$0xff]  ;;  %598 = vmatpush2.msra.mxu1 %v328_v51  ;;  %438 = vmatprep.subr.mxu0 %v197_v52  ;;  %v298_v39 = vld [vmem:[#allocation2 + $0x570] sm:$0xff] }
  0x49   :  { %v1772_v56 = vld [vmem:[%s2916_s0] sm:$0xff]  ;;  %v193_v57 = vld [vmem:[#allocation2 + $0x228] sm:$0xff]  ;;  %599 = vmatprep.subr.mxu1 %v325_v53  ;;  %439 = vmatpush2.msra.mxu0 %v196_v54  ;;  %v167_v40 = vld [vmem:[#allocation2 + $0x158] sm:$0xff] }
  0x4a   :  { %v321_v58 = vld [vmem:[#allocation2 + $0x628] sm:$0xff]  ;;  %v192_v60 = vld [vmem:[#allocation2 + $0x220] sm:$0xff]  ;;  %600 = vmatpush2.msra.mxu1 %v324_v55  ;;  %v61_v0 = vunpack.c.h.bf16 %v1772_v56  ;;  %440 = vmatprep.subr.mxu0 %v193_v57  ;;  %v60_v3 = vunpack.c.l.bf16 %v1772_v56  ;;  %v295_v41 = vld [vmem:[#allocation2 + $0x558] sm:$0xff] }
  0x4b   :  { %v1777_v59 = vld [vmem:[%s2916_s0 + $0x8] sm:$0xff]  ;;  %v320_v61 = vld [vmem:[#allocation2 + $0x620] sm:$0xff]  ;;  %601 = vmatprep.subr.mxu1 %v321_v58  ;;  %441 = vmatpush2.msra.mxu0 %v192_v60  ;;  %v166_v44 = vld [vmem:[#allocation2 + $0x150] sm:$0xff] }
  0x4c   :  { %v189_v62 = vld [vmem:[#allocation2 + $0x208] sm:$0xff]  ;;  %v188_v1 = vld [vmem:[#allocation2 + $0x200] sm:$0xff]  ;;  %v63_v2 = vunpack.c.h.bf16 %v1777_v59  ;;  %602 = vmatpush2.msra.mxu1 %v320_v61  ;;  %v62_v5 = vunpack.c.l.bf16 %v1777_v59  ;;  %444 = vmatprep.mubr.f32.mxu0 %v61_v0  ;;  %v294_v45 = vld [vmem:[#allocation2 + $0x550] sm:$0xff] }
  0x4d   :  { %v317_v63 = vld [vmem:[#allocation2 + $0x608] sm:$0xff]  ;;  %v316_v4 = vld [vmem:[#allocation2 + $0x600] sm:$0xff]  ;;  %442 = vmatprep.subr.mxu0 %v189_v62  ;;  %v163_v50 = vld [vmem:[#allocation2 + $0x138] sm:$0xff] }
  0x4e   :  { %603 = vmatprep.subr.mxu1 %v317_v63  ;;  %443 = vmatpush2.msra.mxu0 %v188_v1  ;;  %v1808_v20 = vld [vmem:[%s2916_s0 + $0x20] sm:$0xff]  ;;  %v1813_v21 = vld [vmem:[%s2916_s0 + $0x28] sm:$0xff]  ;;  %v291_v51 = vld [vmem:[#allocation2 + $0x538] sm:$0xff] }
  0x4f   :  { %604 = vmatpush2.msra.mxu1 %v316_v4  ;;  %605 = vmatprep.mubr.f32.mxu1 %v63_v2  ;;  %v69_v28 = vunpack.c.h.bf16 %v1808_v20  ;;  %v71_v29 = vunpack.c.h.bf16 %v1813_v21  ;;  %v68_v32 = vunpack.c.l.bf16 %v1808_v20  ;;  %v70_v33 = vunpack.c.l.bf16 %v1813_v21  ;;  %v1852_v48 = vld [vmem:[%s2916_s0 + $0x40] sm:$0xff]  ;;  %v1857_v49 = vld [vmem:[%s2916_s0 + $0x48] sm:$0xff]  ;;  %v162_v52 = vld [vmem:[#allocation2 + $0x130] sm:$0xff] }
  0x50   :  { %445 = vmatmul.mubr.f32.vlgmr.msra.gmra.mxu0 %v60_v3  ;;  %606 = vmatmul.mubr.f32.vlgmr.msra.gmra.mxu1 %v62_v5  ;;  %v290_v53 = vld [vmem:[#allocation2 + $0x530] sm:$0xff]  ;;  %v159_v54 = vld [vmem:[#allocation2 + $0x118] sm:$0xff]  ;;  %v77_v57 = vunpack.c.h.bf16 %v1852_v48  ;;  %v79_v58 = vunpack.c.h.bf16 %v1857_v49  ;;  %v2959_v62 = vunpack.c.l.bf16 %v1852_v48  ;;  %v2956_v63 = vunpack.c.l.bf16 %v1857_v49 }
  0x51   :  { %702 = vmatprep.subr.mxu0 %v187_v8  ;;  %863 = vmatprep.subr.mxu1 %v315_v9  ;;  %v287_v55 = vld [vmem:[#allocation2 + $0x518] sm:$0xff]  ;;  %v158_v60 = vld [vmem:[#allocation2 + $0x110] sm:$0xff]  ;;  %v2962_v56 = vunpack.c.l.bf16 %v1852_v48  ;;  %v2963_v59 = vunpack.c.l.bf16 %v1857_v49 }
  0x52   :  { %703 = vmatpush1.msra.mxu0 %v186_v10  ;;  %864 = vmatpush1.msra.mxu1 %v314_v11  ;;  %v286_v61 = vld [vmem:[#allocation2 + $0x510] sm:$0xff]  ;;  %v1879_v4 = vld [vmem:[%s2916_s0 + $0x58] sm:$0xff] }
  0x53   :  { %704 = vmatprep.subr.mxu0 %v183_v12  ;;  %865 = vmatprep.subr.mxu1 %v311_v13  ;;  %v1874_v1 = vld [vmem:[%s2916_s0 + $0x50] sm:$0xff]  ;;  %v155_v8 = vld [vmem:[#allocation2 + $0xf8] sm:$0xff] }
  0x54   :  { %450 = vmatprep.mubr.f32.mxu0 %v65_v14  ;;  %611 = vmatprep.mubr.f32.mxu1 %v67_v15  ;;  %v283_v9 = vld [vmem:[#allocation2 + $0x4f8] sm:$0xff]  ;;  %v154_v10 = vld [vmem:[#allocation2 + $0xf0] sm:$0xff] }
  0x55   :  { %705 = vmatpush1.msra.mxu0 %v182_v16  ;;  %866 = vmatpush1.msra.mxu1 %v310_v17  ;;  %v282_v11 = vld [vmem:[#allocation2 + $0x4f0] sm:$0xff]  ;;  %v151_v12 = vld [vmem:[#allocation2 + $0xd8] sm:$0xff]  ;;  %v2953_v16 = vunpack.c.h.bf16 %v1874_v1  ;;  %v2950_v17 = vunpack.c.h.bf16 %v1879_v4 }
  0x56   :  { %451 = vmatmul.mubr.f32.gmra.mxu0 %v64_v18  ;;  %612 = vmatmul.mubr.f32.gmra.mxu1 %v66_v19  ;;  %v279_v13 = vld [vmem:[#allocation2 + $0x4d8] sm:$0xff] }
  0x57   :  { %706 = vmatprep.subr.mxu0 %v179_v22  ;;  %867 = vmatprep.subr.mxu1 %v307_v23  ;;  %v150_v22 = vld [vmem:[#allocation2 + $0xd0] sm:$0xff] }
  0x58   :  { %707 = vmatpush1.msra.mxu0 %v178_v24  ;;  %868 = vmatpush1.msra.mxu1 %v306_v25  ;;  %v278_v23 = vld [vmem:[#allocation2 + $0x4d0] sm:$0xff]  ;;  %v2947_v24 = vunpack.c.l.bf16 %v1874_v1  ;;  %v2944_v25 = vunpack.c.l.bf16 %v1879_v4 }
  0x59   :  { %708 = vmatprep.subr.mxu0 %v175_v26  ;;  %869 = vmatprep.subr.mxu1 %v303_v27  ;;  %v1896_v26 = vld [vmem:[%s2916_s0 + $0x60] sm:$0xff]  ;;  %v1901_v27 = vld [vmem:[%s2916_s0 + $0x68] sm:$0xff] }
  0x5a   :  { %456 = vmatprep.mubr.f32.mxu0 %v69_v28  ;;  %617 = vmatprep.mubr.f32.mxu1 %v71_v29  ;;  %v2968_v6 = vunpack.c.h.bf16 %v1896_v26  ;;  %v2969_v7 = vunpack.c.h.bf16 %v1901_v27 }
  0x5b   :  { %709 = vmatpush1.msra.mxu0 %v174_v30  ;;  %870 = vmatpush1.msra.mxu1 %v302_v31  ;;  %v147_v30 = vld [vmem:[#allocation2 + $0xb8] sm:$0xff] }
  0x5c   :  { %457 = vmatmul.mubr.f32.gmra.mxu0 %v68_v32  ;;  %618 = vmatmul.mubr.f32.gmra.mxu1 %v70_v33  ;;  %v275_v31 = vld [vmem:[#allocation2 + $0x4b8] sm:$0xff] }
  0x5d   :  { %710 = vmatprep.subr.mxu0 %v171_v36  ;;  %871 = vmatprep.subr.mxu1 %v299_v37  ;;  %v146_v36 = vld [vmem:[#allocation2 + $0xb0] sm:$0xff] }
  0x5e   :  { %711 = vmatpush1.msra.mxu0 %v170_v38  ;;  %872 = vmatpush1.msra.mxu1 %v298_v39  ;;  %v274_v37 = vld [vmem:[#allocation2 + $0x4b0] sm:$0xff]  ;;  %v143_v38 = vld [vmem:[#allocation2 + $0x98] sm:$0xff] }
  0x5f   :  { %712 = vmatprep.subr.mxu0 %v167_v40  ;;  %873 = vmatprep.subr.mxu1 %v295_v41  ;;  %v271_v39 = vld [vmem:[#allocation2 + $0x498] sm:$0xff]  ;;  %v2941_v40 = vunpack.c.h.bf16 %v1896_v26  ;;  %v2938_v41 = vunpack.c.h.bf16 %v1901_v27 }
  0x60   :  { %462 = vmatprep.mubr.f32.mxu0 %v73_v42  ;;  %623 = vmatprep.mubr.f32.mxu1 %v75_v43 }
  0x61   :  { %713 = vmatpush1.msra.mxu0 %v166_v44  ;;  %874 = vmatpush1.msra.mxu1 %v294_v45  ;;  %v142_v44 = vld [vmem:[#allocation2 + $0x90] sm:$0xff] }
  0x62   :  { %463 = vmatmul.mubr.f32.gmra.mxu0 %v72_v46  ;;  %624 = vmatmul.mubr.f32.gmra.mxu1 %v74_v47  ;;  %v270_v45 = vld [vmem:[#allocation2 + $0x490] sm:$0xff] }
  0x63   :  { %714 = vmatprep.subr.mxu0 %v163_v50  ;;  %875 = vmatprep.subr.mxu1 %v291_v51  ;;  %v2935_v50 = vunpack.c.l.bf16 %v1896_v26  ;;  %v2932_v51 = vunpack.c.l.bf16 %v1901_v27 }
  0x64   :  { %715 = vmatpush1.msra.mxu0 %v162_v52  ;;  %876 = vmatpush1.msra.mxu1 %v290_v53  ;;  %v1918_v52 = vld [vmem:[%s2916_s0 + $0x70] sm:$0xff]  ;;  %v1923_v53 = vld [vmem:[%s2916_s0 + $0x78] sm:$0xff] }
  0x65   :  { %716 = vmatprep.subr.mxu0 %v159_v54  ;;  %877 = vmatprep.subr.mxu1 %v287_v55  ;;  %v139_v54 = vld [vmem:[#allocation2 + $0x78] sm:$0xff]  ;;  %v2974_v20 = vunpack.c.l.bf16 %v1918_v52  ;;  %v2975_v21 = vunpack.c.l.bf16 %v1923_v53 }
  0x66   :  { %468 = vmatprep.mubr.f32.mxu0 %v77_v57  ;;  %629 = vmatprep.mubr.f32.mxu1 %v79_v58  ;;  %v267_v55 = vld [vmem:[#allocation2 + $0x478] sm:$0xff] }
  0x67   :  { %717 = vmatpush1.msra.mxu0 %v158_v60  ;;  %878 = vmatpush1.msra.mxu1 %v286_v61  ;;  %v138_v60 = vld [vmem:[#allocation2 + $0x70] sm:$0xff] }
  0x68   :  { %469 = vmatmul.mubr.f32.gmra.mxu0 %v2959_v62  ;;  %630 = vmatmul.mubr.f32.gmra.mxu1 %v2956_v63  ;;  %v266_v61 = vld [vmem:[#allocation2 + $0x470] sm:$0xff] }
  0x69   :  { %718 = vmatprep.subr.mxu0 %v155_v8  ;;  %879 = vmatprep.subr.mxu1 %v283_v9  ;;  %v135_v8 = vld [vmem:[#allocation2 + $0x58] sm:$0xff] }
  0x6a   :  { %719 = vmatpush1.msra.mxu0 %v154_v10  ;;  %880 = vmatpush1.msra.mxu1 %v282_v11  ;;  %v263_v9 = vld [vmem:[#allocation2 + $0x458] sm:$0xff]  ;;  %v2929_v10 = vunpack.c.h.bf16 %v1918_v52  ;;  %v2926_v11 = vunpack.c.h.bf16 %v1923_v53 }
  0x6b   :  { %720 = vmatprep.subr.mxu0 %v151_v12  ;;  %881 = vmatprep.subr.mxu1 %v279_v13  ;;  %v134_v12 = vld [vmem:[#allocation2 + $0x50] sm:$0xff] }
  0x6c   :  { %474 = vmatprep.mubr.f32.mxu0 %v2953_v16  ;;  %635 = vmatprep.mubr.f32.mxu1 %v2950_v17  ;;  %v262_v13 = vld [vmem:[#allocation2 + $0x450] sm:$0xff] }
  0x6d   :  { %721 = vmatpush1.msra.mxu0 %v150_v22  ;;  %882 = vmatpush1.msra.mxu1 %v278_v23  ;;  %v2923_v22 = vunpack.c.l.bf16 %v1918_v52  ;;  %v2920_v23 = vunpack.c.l.bf16 %v1923_v53 }
  0x6e   :  { %475 = vmatmul.mubr.f32.gmra.mxu0 %v2947_v24  ;;  %636 = vmatmul.mubr.f32.gmra.mxu1 %v2944_v25 }
  0x6f   :  { %722 = vmatprep.subr.mxu0 %v147_v30  ;;  %883 = vmatprep.subr.mxu1 %v275_v31  ;;  %v1940_v30 = vld [vmem:[%s2916_s0 + $0x80] sm:$0xff]  ;;  %v1945_v31 = vld [vmem:[%s2916_s0 + $0x88] sm:$0xff] }
  0x70   :  { %723 = vmatpush1.msra.mxu0 %v146_v36  ;;  %884 = vmatpush1.msra.mxu1 %v274_v37  ;;  %v131_v36 = vld [vmem:[#allocation2 + $0x38] sm:$0xff] }
  0x71   :  { %724 = vmatprep.subr.mxu0 %v143_v38  ;;  %885 = vmatprep.subr.mxu1 %v271_v39  ;;  %v259_v37 = vld [vmem:[#allocation2 + $0x438] sm:$0xff]  ;;  %v130_v38 = vld [vmem:[#allocation2 + $0x30] sm:$0xff] }
  0x72   :  { %480 = vmatprep.mubr.f32.mxu0 %v2941_v40  ;;  %641 = vmatprep.mubr.f32.mxu1 %v2938_v41  ;;  %v258_v39 = vld [vmem:[#allocation2 + $0x430] sm:$0xff] }
  0x73   :  { %725 = vmatpush1.msra.mxu0 %v142_v44  ;;  %886 = vmatpush1.msra.mxu1 %v270_v45  ;;  %v127_v44 = vld [vmem:[#allocation2 + $0x18] sm:$0xff] }
  0x74   :  { %481 = vmatmul.mubr.f32.gmra.mxu0 %v2935_v50  ;;  %642 = vmatmul.mubr.f32.gmra.mxu1 %v2932_v51  ;;  %v255_v45 = vld [vmem:[#allocation2 + $0x418] sm:$0xff] }
  0x75   :  { %726 = vmatprep.subr.mxu0 %v139_v54  ;;  %887 = vmatprep.subr.mxu1 %v267_v55  ;;  %v2921_v54 = vunpack.c.h.bf16 %v1940_v30  ;;  %v2922_v55 = vunpack.c.h.bf16 %v1945_v31 }
  0x76   :  { %727 = vmatpush1.msra.mxu0 %v138_v60  ;;  %888 = vmatpush1.msra.mxu1 %v266_v61  ;;  %v126_v60 = vld [vmem:[#allocation2 + $0x10] sm:$0xff] }
  0x77   :  { %728 = vmatprep.subr.mxu0 %v135_v8  ;;  %889 = vmatprep.subr.mxu1 %v263_v9  ;;  %v254_v61 = vld [vmem:[#allocation2 + $0x410] sm:$0xff]  ;;  %v2925_v8 = vunpack.c.l.bf16 %v1940_v30  ;;  %v2924_v9 = vunpack.c.l.bf16 %v1945_v31 }
  0x78   :  { %486 = vmatprep.mubr.f32.mxu0 %v2929_v10  ;;  %647 = vmatprep.mubr.f32.mxu1 %v2926_v11 }
  0x79   :  { %729 = vmatpush1.msra.mxu0 %v134_v12  ;;  %890 = vmatpush1.msra.mxu1 %v262_v13  ;;  %v1962_v12 = vld [vmem:[%s2916_s0 + $0x90] sm:$0xff]  ;;  %v1967_v13 = vld [vmem:[%s2916_s0 + $0x98] sm:$0xff] }
  0x7a   :  { %487 = vmatmul.mubr.f32.gmra.mxu0 %v2923_v22  ;;  %648 = vmatmul.mubr.f32.gmra.mxu1 %v2920_v23  ;;  %v2927_v23 = vunpack.c.h.bf16 %v1962_v12  ;;  %v2930_v22 = vunpack.c.l.bf16 %v1967_v13  ;;  %v2980_v34 = vunpack.c.h.bf16 %v1962_v12  ;;  %v2981_v35 = vunpack.c.h.bf16 %v1967_v13 }
  0x7b   :  { %730 = vmatprep.subr.mxu0 %v131_v36  ;;  %891 = vmatprep.subr.mxu1 %v259_v37  ;;  %v251_v36 = vld [vmem:[#allocation2 + $0x3f8] sm:$0xff] }
  0x7c   :  { %731 = vmatpush1.msra.mxu0 %v130_v38  ;;  %892 = vmatpush1.msra.mxu1 %v258_v39  ;;  %v379_v37 = vld [vmem:[#allocation2 + $0x7f8] sm:$0xff]  ;;  %v250_v38 = vld [vmem:[#allocation2 + $0x3f0] sm:$0xff] }
  0x7d   :  { %732 = vmatprep.subr.mxu0 %v127_v44  ;;  %893 = vmatprep.subr.mxu1 %v255_v45  ;;  %v378_v39 = vld [vmem:[#allocation2 + $0x7f0] sm:$0xff]  ;;  %v247_v44 = vld [vmem:[#allocation2 + $0x3d8] sm:$0xff] }
  0x7e   :  { %492 = vmatprep.mubr.f32.mxu0 %v2921_v54  ;;  %653 = vmatprep.mubr.f32.mxu1 %v2922_v55  ;;  %v375_v45 = vld [vmem:[#allocation2 + $0x7d8] sm:$0xff]  ;;  %v2928_v54 = vunpack.c.h.bf16 %v1967_v13  ;;  %v2931_v55 = vunpack.c.l.bf16 %v1962_v12 }
  0x7f   :  { %733 = vmatpush1.msra.mxu0 %v126_v60  ;;  %894 = vmatpush1.msra.mxu1 %v254_v61  ;;  %v246_v60 = vld [vmem:[#allocation2 + $0x3d0] sm:$0xff] }
  0x80   :  { %493 = vmatmul.mubr.f32.gmra.mxu0 %v2925_v8  ;;  %654 = vmatmul.mubr.f32.gmra.mxu1 %v2924_v9  ;;  %v374_v61 = vld [vmem:[#allocation2 + $0x7d0] sm:$0xff]  ;;  %v1984_v9 = vld [vmem:[%s2916_s0 + $0xa0] sm:$0xff]  ;;  %v367_v8 = vld [vmem:[#allocation2 + $0x798] sm:$0xff] }
  0x81   :  { %734 = vmatprep.subr.mxu0 %v251_v36  ;;  %895 = vmatprep.subr.mxu1 %v379_v37  ;;  %v1989_v36 = vld [vmem:[%s2916_s0 + $0xa8] sm:$0xff]  ;;  %v243_v37 = vld [vmem:[#allocation2 + $0x3b8] sm:$0xff]  ;;  %v2933_v11 = vunpack.c.h.bf16 %v1984_v9  ;;  %v2986_v48 = vunpack.c.l.bf16 %v1984_v9 }
  0x82   :  { %735 = vmatpush2.msra.mxu0 %v250_v38  ;;  %896 = vmatpush2.msra.mxu1 %v378_v39  ;;  %v371_v38 = vld [vmem:[#allocation2 + $0x7b8] sm:$0xff]  ;;  %v242_v39 = vld [vmem:[#allocation2 + $0x3b0] sm:$0xff]  ;;  %v2936_v10 = vunpack.c.l.bf16 %v1989_v36  ;;  %v2987_v49 = vunpack.c.l.bf16 %v1989_v36 }
  0x83   :  { %736 = vmatprep.subr.mxu0 %v247_v44  ;;  %897 = vmatprep.subr.mxu1 %v375_v45  ;;  %v370_v44 = vld [vmem:[#allocation2 + $0x7b0] sm:$0xff]  ;;  %v239_v45 = vld [vmem:[#allocation2 + $0x398] sm:$0xff] }
  0x84   :  { %498 = vmatprep.mubr.f32.mxu0 %v2927_v23  ;;  %659 = vmatprep.mubr.f32.mxu1 %v2928_v54  ;;  %v2934_v23 = vunpack.c.h.bf16 %v1989_v36  ;;  %v2937_v54 = vunpack.c.l.bf16 %v1984_v9 }
  0x85   :  { %737 = vmatpush2.msra.mxu0 %v246_v60  ;;  %898 = vmatpush2.msra.mxu1 %v374_v61  ;;  %v238_v60 = vld [vmem:[#allocation2 + $0x390] sm:$0xff] }
  0x86   :  { %499 = vmatmul.mubr.f32.gmra.mxu0 %v2931_v55  ;;  %660 = vmatmul.mubr.f32.gmra.mxu1 %v2930_v22  ;;  %v366_v61 = vld [vmem:[#allocation2 + $0x790] sm:$0xff]  ;;  %v359_v55 = vld [vmem:[#allocation2 + $0x758] sm:$0xff] }
  0x87   :  { %738 = vmatprep.subr.mxu0 %v243_v37  ;;  %899 = vmatprep.subr.mxu1 %v371_v38  ;;  %v2006_v22 = vld [vmem:[%s2916_s0 + $0xb0] sm:$0xff]  ;;  %v2011_v37 = vld [vmem:[%s2916_s0 + $0xb8] sm:$0xff] }
  0x88   :  { %739 = vmatpush2.msra.mxu0 %v242_v39  ;;  %900 = vmatpush2.msra.mxu1 %v370_v44  ;;  %v235_v38 = vld [vmem:[#allocation2 + $0x378] sm:$0xff]  ;;  %v362_v44 = vld [vmem:[#allocation2 + $0x770] sm:$0xff]  ;;  %v2939_v51 = vunpack.c.h.bf16 %v2006_v22  ;;  %v2942_v50 = vunpack.c.l.bf16 %v2011_v37 }
  0x89   :  { %740 = vmatprep.subr.mxu0 %v239_v45  ;;  %901 = vmatprep.subr.mxu1 %v367_v8  ;;  %v363_v39 = vld [vmem:[#allocation2 + $0x778] sm:$0xff]  ;;  %v234_v8 = vld [vmem:[#allocation2 + $0x370] sm:$0xff] }
  0x8a   :  { %504 = vmatprep.mubr.f32.mxu0 %v2933_v11  ;;  %665 = vmatprep.mubr.f32.mxu1 %v2934_v23  ;;  %v231_v45 = vld [vmem:[#allocation2 + $0x358] sm:$0xff]  ;;  %v2940_v11 = vunpack.c.h.bf16 %v2011_v37  ;;  %v2943_v23 = vunpack.c.l.bf16 %v2006_v22 }
  0x8b   :  { %741 = vmatpush2.msra.mxu0 %v238_v60  ;;  %902 = vmatpush2.msra.mxu1 %v366_v61  ;;  %v230_v60 = vld [vmem:[#allocation2 + $0x350] sm:$0xff] }
  0x8c   :  { %505 = vmatmul.mubr.f32.gmra.mxu0 %v2937_v54  ;;  %666 = vmatmul.mubr.f32.gmra.mxu1 %v2936_v10  ;;  %v358_v61 = vld [vmem:[#allocation2 + $0x750] sm:$0xff]  ;;  %v2028_v10 = vld [vmem:[%s2916_s0 + $0xc0] sm:$0xff]  ;;  %v351_v54 = vld [vmem:[#allocation2 + $0x718] sm:$0xff] }
  0x8d   :  { %742 = vmatprep.subr.mxu0 %v235_v38  ;;  %903 = vmatprep.subr.mxu1 %v363_v39  ;;  %v2033_v38 = vld [vmem:[%s2916_s0 + $0xc8] sm:$0xff]  ;;  %v227_v39 = vld [vmem:[#allocation2 + $0x338] sm:$0xff]  ;;  %v2945_v41 = vunpack.c.h.bf16 %v2028_v10 }
  0x8e   :  { %743 = vmatpush2.msra.mxu0 %v234_v8  ;;  %904 = vmatpush2.msra.mxu1 %v362_v44  ;;  %v355_v8 = vld [vmem:[#allocation2 + $0x738] sm:$0xff]  ;;  %v354_v44 = vld [vmem:[#allocation2 + $0x730] sm:$0xff]  ;;  %v2948_v40 = vunpack.c.l.bf16 %v2033_v38 }
  0x8f   :  { %744 = vmatprep.subr.mxu0 %v231_v45  ;;  %905 = vmatprep.subr.mxu1 %v359_v55  ;;  %v226_v55 = vld [vmem:[#allocation2 + $0x330] sm:$0xff]  ;;  %v223_v45 = vld [vmem:[#allocation2 + $0x318] sm:$0xff] }
  0x90   :  { %510 = vmatprep.mubr.f32.mxu0 %v2939_v51  ;;  %671 = vmatprep.mubr.f32.mxu1 %v2940_v11  ;;  %v2946_v51 = vunpack.c.h.bf16 %v2033_v38  ;;  %v2949_v11 = vunpack.c.l.bf16 %v2028_v10 }
  0x91   :  { %745 = vmatpush2.msra.mxu0 %v230_v60  ;;  %906 = vmatpush2.msra.mxu1 %v358_v61  ;;  %v222_v60 = vld [vmem:[#allocation2 + $0x310] sm:$0xff] }
  0x92   :  { %511 = vmatmul.mubr.f32.gmra.mxu0 %v2943_v23  ;;  %672 = vmatmul.mubr.f32.gmra.mxu1 %v2942_v50  ;;  %v350_v61 = vld [vmem:[#allocation2 + $0x710] sm:$0xff]  ;;  %v343_v23 = vld [vmem:[#allocation2 + $0x6d8] sm:$0xff] }
  0x93   :  { %746 = vmatprep.subr.mxu0 %v227_v39  ;;  %907 = vmatprep.subr.mxu1 %v355_v8  ;;  %v2050_v50 = vld [vmem:[%s2916_s0 + $0xd0] sm:$0xff]  ;;  %v2055_v39 = vld [vmem:[%s2916_s0 + $0xd8] sm:$0xff] }
  0x94   :  { %747 = vmatpush2.msra.mxu0 %v226_v55  ;;  %908 = vmatpush2.msra.mxu1 %v354_v44  ;;  %v219_v8 = vld [vmem:[#allocation2 + $0x2f8] sm:$0xff]  ;;  %v346_v44 = vld [vmem:[#allocation2 + $0x6f0] sm:$0xff]  ;;  %v2951_v25 = vunpack.c.h.bf16 %v2050_v50  ;;  %v2954_v24 = vunpack.c.l.bf16 %v2055_v39 }
  0x95   :  { %748 = vmatprep.subr.mxu0 %v223_v45  ;;  %909 = vmatprep.subr.mxu1 %v351_v54  ;;  %v347_v55 = vld [vmem:[#allocation2 + $0x6f8] sm:$0xff]  ;;  %v218_v54 = vld [vmem:[#allocation2 + $0x2f0] sm:$0xff] }
  0x96   :  { %516 = vmatprep.mubr.f32.mxu0 %v2945_v41  ;;  %677 = vmatprep.mubr.f32.mxu1 %v2946_v51  ;;  %v215_v45 = vld [vmem:[#allocation2 + $0x2d8] sm:$0xff]  ;;  %v2952_v41 = vunpack.c.h.bf16 %v2055_v39  ;;  %v2955_v51 = vunpack.c.l.bf16 %v2050_v50 }
  0x97   :  { %749 = vmatpush2.msra.mxu0 %v222_v60  ;;  %910 = vmatpush2.msra.mxu1 %v350_v61  ;;  %v214_v60 = vld [vmem:[#allocation2 + $0x2d0] sm:$0xff] }
  0x98   :  { %517 = vmatmul.mubr.f32.gmra.mxu0 %v2949_v11  ;;  %678 = vmatmul.mubr.f32.gmra.mxu1 %v2948_v40  ;;  %v342_v61 = vld [vmem:[#allocation2 + $0x6d0] sm:$0xff]  ;;  %v2072_v40 = vld [vmem:[%s2916_s0 + $0xe0] sm:$0xff]  ;;  %v335_v11 = vld [vmem:[#allocation2 + $0x698] sm:$0xff] }
  0x99   :  { %750 = vmatprep.subr.mxu0 %v219_v8  ;;  %911 = vmatprep.subr.mxu1 %v347_v55  ;;  %v2077_v8 = vld [vmem:[%s2916_s0 + $0xe8] sm:$0xff]  ;;  %v211_v55 = vld [vmem:[#allocation2 + $0x2b8] sm:$0xff]  ;;  %v2957_v17 = vunpack.c.h.bf16 %v2072_v40 }
  0x9a   :  { %751 = vmatpush2.msra.mxu0 %v218_v54  ;;  %912 = vmatpush2.msra.mxu1 %v346_v44  ;;  %v339_v54 = vld [vmem:[#allocation2 + $0x6b8] sm:$0xff]  ;;  %v338_v44 = vld [vmem:[#allocation2 + $0x6b0] sm:$0xff]  ;;  %v2960_v16 = vunpack.c.l.bf16 %v2077_v8 }
  0x9b   :  { %752 = vmatprep.subr.mxu0 %v215_v45  ;;  %913 = vmatprep.subr.mxu1 %v343_v23  ;;  %v210_v23 = vld [vmem:[#allocation2 + $0x2b0] sm:$0xff]  ;;  %v207_v45 = vld [vmem:[#allocation2 + $0x298] sm:$0xff] }
  0x9c   :  { %522 = vmatprep.mubr.f32.mxu0 %v2951_v25  ;;  %683 = vmatprep.mubr.f32.mxu1 %v2952_v41  ;;  %v2958_v25 = vunpack.c.h.bf16 %v2077_v8  ;;  %v2961_v41 = vunpack.c.l.bf16 %v2072_v40 }
  0x9d   :  { %753 = vmatpush2.msra.mxu0 %v214_v60  ;;  %914 = vmatpush2.msra.mxu1 %v342_v61  ;;  %v206_v60 = vld [vmem:[#allocation2 + $0x290] sm:$0xff] }
  0x9e   :  { %523 = vmatmul.mubr.f32.gmra.mxu0 %v2955_v51  ;;  %684 = vmatmul.mubr.f32.gmra.mxu1 %v2954_v24  ;;  %v334_v61 = vld [vmem:[#allocation2 + $0x690] sm:$0xff]  ;;  %v327_v51 = vld [vmem:[#allocation2 + $0x658] sm:$0xff] }
  0x9f   :  { %754 = vmatprep.subr.mxu0 %v211_v55  ;;  %915 = vmatprep.subr.mxu1 %v339_v54  ;;  %v2094_v24 = vld [vmem:[%s2916_s0 + $0xf0] sm:$0xff]  ;;  %v2099_v55 = vld [vmem:[%s2916_s0 + $0xf8] sm:$0xff] }
  0xa0   :  { %755 = vmatpush2.msra.mxu0 %v210_v23  ;;  %916 = vmatpush2.msra.mxu1 %v338_v44  ;;  %v203_v54 = vld [vmem:[#allocation2 + $0x278] sm:$0xff]  ;;  %v330_v44 = vld [vmem:[#allocation2 + $0x670] sm:$0xff]  ;;  %v121_v63 = vunpack.c.h.bf16 %v2094_v24  ;;  %v122_v62 = vunpack.c.l.bf16 %v2099_v55 }
  0xa1   :  { %756 = vmatprep.subr.mxu0 %v207_v45  ;;  %917 = vmatprep.subr.mxu1 %v335_v11  ;;  %v331_v23 = vld [vmem:[#allocation2 + $0x678] sm:$0xff]  ;;  %v202_v11 = vld [vmem:[#allocation2 + $0x270] sm:$0xff] }
  0xa2   :  { %528 = vmatprep.mubr.f32.mxu0 %v2957_v17  ;;  %689 = vmatprep.mubr.f32.mxu1 %v2958_v25  ;;  %v199_v45 = vld [vmem:[#allocation2 + $0x258] sm:$0xff]  ;;  %v123_v17 = vunpack.c.h.bf16 %v2099_v55  ;;  %v120_v25 = vunpack.c.l.bf16 %v2094_v24  ;;  %v1357_v24 = vld [vmem:[%s2918_s2 + $0x68] sm:$0xff] }
  0xa3   :  { %757 = vmatpush2.msra.mxu0 %v206_v60  ;;  %918 = vmatpush2.msra.mxu1 %v334_v61  ;;  %v198_v60 = vld [vmem:[#allocation2 + $0x250] sm:$0xff]  ;;  %v1353_v55 = vld [vmem:[%s2918_s2 + $0x48] sm:$0xff] }
  0xa4   :  { %529 = vmatmul.mubr.f32.gmra.mxu0 %v2961_v41  ;;  %690 = vmatmul.mubr.f32.gmra.mxu1 %v2960_v16  ;;  %v326_v61 = vld [vmem:[#allocation2 + $0x650] sm:$0xff]  ;;  %v195_v16 = vld [vmem:[#allocation2 + $0x238] sm:$0xff] }
  0xa5   :  { %758 = vmatprep.subr.mxu0 %v203_v54  ;;  %919 = vmatprep.subr.mxu1 %v331_v23  ;;  %v323_v41 = vld [vmem:[#allocation2 + $0x638] sm:$0xff]  ;;  %v194_v54 = vld [vmem:[#allocation2 + $0x230] sm:$0xff] }
  0xa6   :  { %759 = vmatpush2.msra.mxu0 %v202_v11  ;;  %920 = vmatpush2.msra.mxu1 %v330_v44  ;;  %v322_v23 = vld [vmem:[#allocation2 + $0x630] sm:$0xff]  ;;  %v191_v11 = vld [vmem:[#allocation2 + $0x218] sm:$0xff] }
  0xa7   :  { %760 = vmatprep.subr.mxu0 %v199_v45  ;;  %921 = vmatprep.subr.mxu1 %v327_v51  ;;  %v319_v51 = vld [vmem:[#allocation2 + $0x618] sm:$0xff]  ;;  %v190_v44 = vld [vmem:[#allocation2 + $0x210] sm:$0xff] }
  0xa8   :  { %534 = vmatprep.mubr.f32.mxu0 %v121_v63  ;;  %695 = vmatprep.mubr.f32.mxu1 %v123_v17  ;;  %v318_v45 = vld [vmem:[#allocation2 + $0x610] sm:$0xff] }
  0xa9   :  { %761 = vmatpush2.msra.mxu0 %v198_v60  ;;  %922 = vmatpush2.msra.mxu1 %v326_v61  ;;  %v1368_v60 = vld [vmem:[%s2918_s2 + $0xc0] sm:$0xff] }
  0xaa   :  { %535 = vmatmul.mubr.f32.gmra.mxu0 %v120_v25  ;;  %696 = vmatmul.mubr.f32.gmra.mxu1 %v122_v62  ;;  %v1352_v61 = vld [vmem:[%s2918_s2 + $0x40] sm:$0xff] }
  0xab   :  { %762 = vmatprep.subr.mxu0 %v195_v16  ;;  %923 = vmatprep.subr.mxu1 %v323_v41  ;;  %v2992_v16 = vunpack.c.h.bf16 %v2028_v10  ;;  %v2995_v41 = vunpack.c.l.bf16 %v2033_v38 }
  0xac   :  { %763 = vmatpush2.msra.mxu0 %v194_v54  ;;  %924 = vmatpush2.msra.mxu1 %v322_v23  ;;  %v1367_v54 = vld [vmem:[%s2918_s2 + $0xb8] sm:$0xff] }
  0xad   :  { %764 = vmatprep.subr.mxu0 %v191_v11  ;;  %925 = vmatprep.subr.mxu1 %v319_v51  ;;  %v1351_v23 = vld [vmem:[%s2918_s2 + $0x38] sm:$0xff]  ;;  %v1366_v11 = vld [vmem:[%s2918_s2 + $0xb0] sm:$0xff] }
  0xae   :  { %765 = vmatpush2.msra.mxu0 %v190_v44  ;;  %766 = vmatprep.mubr.f32.mxu0 %v61_v0  ;;  %v2964_v0 = vunpack.c.h.bf16 %v1874_v1  ;;  %v1350_v51 = vld [vmem:[%s2918_s2 + $0x30] sm:$0xff]  ;;  %v1365_v44 = vld [vmem:[%s2918_s2 + $0xa8] sm:$0xff] }
  0xaf   :  { %926 = vmatpush2.msra.mxu1 %v318_v45  ;;  %927 = vmatprep.mubr.f32.mxu1 %v63_v2  ;;  %v2965_v2 = vunpack.c.h.bf16 %v1879_v4  ;;  %v1349_v45 = vld [vmem:[%s2918_s2 + $0x28] sm:$0xff] }
  0xb0   :  { %767 = vmatmul.mubr.f32.vlgmr.msra.gmra.mxu0 %v60_v3  ;;  %928 = vmatmul.mubr.f32.vlgmr.msra.gmra.mxu1 %v62_v5  ;;  %v2966_v3 = vunpack.c.l.bf16 %v1874_v1  ;;  %v2967_v5 = vunpack.c.l.bf16 %v1879_v4  ;;  %v2990_v1 = vunpack.c.l.bf16 %v2006_v22  ;;  %v2991_v4 = vunpack.c.l.bf16 %v2011_v37 }
  0xb1   :  { %772 = vmatprep.mubr.f32.mxu0 %v65_v14  ;;  %933 = vmatprep.mubr.f32.mxu1 %v67_v15  ;;  %v2970_v14 = vunpack.c.l.bf16 %v1896_v26  ;;  %v2971_v15 = vunpack.c.l.bf16 %v1901_v27  ;;  %v2993_v26 = vunpack.c.h.bf16 %v2033_v38  ;;  %v2994_v27 = vunpack.c.l.bf16 %v2028_v10  ;;  %v1370_v38 = vld [vmem:[%s2918_s2 + $0xd0] sm:$0xff] }
  0xb2   :  { %v3001_v10 = vunpack.c.h.bf16 %v2077_v8 }
  0xb4   :  { %773 = vmatmul.mubr.f32.gmra.mxu0 %v64_v18  ;;  %934 = vmatmul.mubr.f32.gmra.mxu1 %v66_v19  ;;  %v2972_v18 = vunpack.c.h.bf16 %v1918_v52  ;;  %v2973_v19 = vunpack.c.h.bf16 %v1923_v53  ;;  %v2996_v52 = vunpack.c.h.bf16 %v2050_v50  ;;  %v2997_v53 = vunpack.c.h.bf16 %v2055_v39 }
  0xb5   :  { %778 = vmatprep.mubr.f32.mxu0 %v69_v28  ;;  %939 = vmatprep.mubr.f32.mxu1 %v71_v29  ;;  %v2976_v28 = vunpack.c.h.bf16 %v1940_v30  ;;  %v2977_v29 = vunpack.c.h.bf16 %v1945_v31 }
  0xb8   :  { %779 = vmatmul.mubr.f32.gmra.mxu0 %v68_v32  ;;  %940 = vmatmul.mubr.f32.gmra.mxu1 %v70_v33  ;;  %v2978_v32 = vunpack.c.l.bf16 %v1940_v30  ;;  %v2979_v33 = vunpack.c.l.bf16 %v1945_v31  ;;  %v2999_v30 = vunpack.c.l.bf16 %v2055_v39  ;;  %v3000_v31 = vunpack.c.h.bf16 %v2072_v40  ;;  %v1354_v39 = vld [vmem:[%s2918_s2 + $0x50] sm:$0xff] }
  0xb9   :  { %784 = vmatprep.mubr.f32.mxu0 %v73_v42  ;;  %945 = vmatprep.mubr.f32.mxu1 %v75_v43  ;;  %v2982_v42 = vunpack.c.l.bf16 %v1962_v12  ;;  %v2983_v43 = vunpack.c.l.bf16 %v1967_v13  ;;  %v3003_v12 = vunpack.c.l.bf16 %v2077_v8  ;;  %v1356_v13 = vld [vmem:[%s2918_s2 + $0x60] sm:$0xff]  ;;  %v1369_v8 = vld [vmem:[%s2918_s2 + $0xc8] sm:$0xff] }
  0xbc   :  { %785 = vmatmul.mubr.f32.gmra.mxu0 %v72_v46  ;;  %946 = vmatmul.mubr.f32.gmra.mxu1 %v74_v47  ;;  %v2984_v46 = vunpack.c.h.bf16 %v1984_v9  ;;  %v2985_v47 = vunpack.c.h.bf16 %v1989_v36  ;;  %v3002_v9 = vunpack.c.l.bf16 %v2072_v40  ;;  %v1359_v40 = vld [vmem:[%s2918_s2 + $0x78] sm:$0xff] }
  0xbd   :  { %790 = vmatprep.mubr.f32.mxu0 %v77_v57  ;;  %951 = vmatprep.mubr.f32.mxu1 %v79_v58  ;;  %v2988_v57 = vunpack.c.h.bf16 %v2006_v22  ;;  %v2989_v58 = vunpack.c.h.bf16 %v2011_v37  ;;  %v2998_v22 = vunpack.c.l.bf16 %v2050_v50  ;;  %v1375_v50 = vld [vmem:[%s2918_s2 + $0xf8] sm:$0xff] }
  0xbe   :  { %1542 = vmatprep.subr.mxu0 %v1375_v50  ;;  %1622 = vmatprep.subr.mxu1 %v1375_v50  ;;  %v1371_v36 = vld [vmem:[%s2918_s2 + $0xd8] sm:$0xff] }
  0xbf   :  { %1543 = vmatpush3.msra.mxu0 %v1359_v40  ;;  %1638 = vmatpush3.msra.mxu1 %v1359_v40  ;;  %v1355_v37 = vld [vmem:[%s2918_s2 + $0x58] sm:$0xff] }
  0xc0   :  { %791 = vmatmul.mubr.f32.gmra.mxu0 %v2962_v56  ;;  %952 = vmatmul.mubr.f32.gmra.mxu1 %v2963_v59  ;;  %v1364_v56 = vld [vmem:[%s2918_s2 + $0xa0] sm:$0xff] }
  0xc1   :  { %796 = vmatprep.mubr.f32.mxu0 %v2964_v0  ;;  %957 = vmatprep.mubr.f32.mxu1 %v2965_v2  ;;  %v1348_v59 = vld [vmem:[%s2918_s2 + $0x20] sm:$0xff]  ;;  %v1363_v0 = vld [vmem:[%s2918_s2 + $0x98] sm:$0xff] }
  0xc2   :  { %v1347_v2 = vld [vmem:[%s2918_s2 + $0x18] sm:$0xff] }
  0xc4   :  { %797 = vmatmul.mubr.f32.gmra.mxu0 %v2966_v3  ;;  %958 = vmatmul.mubr.f32.gmra.mxu1 %v2967_v5  ;;  %v1362_v3 = vld [vmem:[%s2918_s2 + $0x90] sm:$0xff] }
  0xc5   :  { %802 = vmatprep.mubr.f32.mxu0 %v2968_v6  ;;  %963 = vmatprep.mubr.f32.mxu1 %v2969_v7  ;;  %v1346_v5 = vld [vmem:[%s2918_s2 + $0x10] sm:$0xff]  ;;  %v1361_v6 = vld [vmem:[%s2918_s2 + $0x88] sm:$0xff] }
  0xc6   :  { %v1345_v7 = vld [vmem:[%s2918_s2 + $0x8] sm:$0xff] }
  0xc8   :  { %803 = vmatmul.mubr.f32.gmra.mxu0 %v2970_v14  ;;  %964 = vmatmul.mubr.f32.gmra.mxu1 %v2971_v15  ;;  %v1360_v14 = vld [vmem:[%s2918_s2 + $0x80] sm:$0xff] }
  0xc9   :  { %808 = vmatprep.mubr.f32.mxu0 %v2972_v18  ;;  %969 = vmatprep.mubr.f32.mxu1 %v2973_v19  ;;  %v1344_v15 = vld [vmem:[%s2918_s2] sm:$0xff] }
  0xcc   :  { %809 = vmatmul.mubr.f32.gmra.mxu0 %v2974_v20  ;;  %970 = vmatmul.mubr.f32.gmra.mxu1 %v2975_v21 }
  0xcd   :  { %814 = vmatprep.mubr.f32.mxu0 %v2976_v28  ;;  %975 = vmatprep.mubr.f32.mxu1 %v2977_v29 }
  0xd0   :  { %815 = vmatmul.mubr.f32.gmra.mxu0 %v2978_v32  ;;  %976 = vmatmul.mubr.f32.gmra.mxu1 %v2979_v33 }
  0xd1   :  { %820 = vmatprep.mubr.f32.mxu0 %v2980_v34  ;;  %981 = vmatprep.mubr.f32.mxu1 %v2981_v35 }
  0xd4   :  { %821 = vmatmul.mubr.f32.gmra.mxu0 %v2982_v42  ;;  %982 = vmatmul.mubr.f32.gmra.mxu1 %v2983_v43 }
  0xd5   :  { %826 = vmatprep.mubr.f32.mxu0 %v2984_v46  ;;  %987 = vmatprep.mubr.f32.mxu1 %v2985_v47 }
  0xd8   :  { %827 = vmatmul.mubr.f32.gmra.mxu0 %v2986_v48  ;;  %988 = vmatmul.mubr.f32.gmra.mxu1 %v2987_v49 }
  0xd9   :  { %832 = vmatprep.mubr.f32.mxu0 %v2988_v57  ;;  %993 = vmatprep.mubr.f32.mxu1 %v2989_v58 }
  0xdc   :  { %833 = vmatmul.mubr.f32.gmra.mxu0 %v2990_v1  ;;  %994 = vmatmul.mubr.f32.gmra.mxu1 %v2991_v4 }
  0xdd   :  { %838 = vmatprep.mubr.f32.mxu0 %v2992_v16  ;;  %999 = vmatprep.mubr.f32.mxu1 %v2993_v26 }
  0xe0   :  { %839 = vmatmul.mubr.f32.gmra.mxu0 %v2994_v27  ;;  %1000 = vmatmul.mubr.f32.gmra.mxu1 %v2995_v41 }
  0xe1   :  { %844 = vmatprep.mubr.f32.mxu0 %v2996_v52  ;;  %1005 = vmatprep.mubr.f32.mxu1 %v2997_v53 }
  0xe4   :  { %845 = vmatmul.mubr.f32.gmra.mxu0 %v2998_v22  ;;  %1006 = vmatmul.mubr.f32.gmra.mxu1 %v2999_v30 }
  0xe5   :  { %850 = vmatprep.mubr.f32.mxu0 %v3000_v31  ;;  %1011 = vmatprep.mubr.f32.mxu1 %v3001_v10 }
  0xe8   :  { %851 = vmatmul.mubr.f32.gmra.mxu0 %v3002_v9  ;;  %1012 = vmatmul.mubr.f32.gmra.mxu1 %v3003_v12 }
  0xe9   :  { %856 = vmatprep.mubr.f32.mxu0 %v121_v63  ;;  %1017 = vmatprep.mubr.f32.mxu1 %v123_v17  ;;  %v1374_v63 = vld [vmem:[%s2918_s2 + $0xf0] sm:$0xff] }
  0xea   :  { %v1358_v17 = vld [vmem:[%s2918_s2 + $0x70] sm:$0xff]  ;;  %1544 = vmatprep.subr.mxu0 %v1374_v63  ;;  %1623 = vmatprep.subr.mxu1 %v1374_v63 }
  0xeb   :  { %1545 = vmatpush3.msra.mxu0 %v1358_v17  ;;  %1639 = vmatpush3.msra.mxu1 %v1358_v17 }
  0xec   :  { %857 = vmatmul.mubr.f32.gmra.mxu0 %v120_v25  ;;  %1018 = vmatmul.mubr.f32.gmra.mxu1 %v122_v62  ;;  %v1373_v62 = vld [vmem:[%s2918_s2 + $0xe8] sm:$0xff]  ;;  %v1372_v25 = vld [vmem:[%s2918_s2 + $0xe0] sm:$0xff] }
  0xed   :  { %1546 = vmatprep.subr.mxu0 %v1373_v62  ;;  %1624 = vmatprep.subr.mxu1 %v1373_v62 }
  0xee   :  { %1547 = vmatpush3.msra.mxu0 %v1357_v24  ;;  %1640 = vmatpush3.msra.mxu1 %v1357_v24 }
  0xef   :  { %1548 = vmatprep.subr.mxu0 %v1372_v25  ;;  %1625 = vmatprep.subr.mxu1 %v1372_v25 }
  0xf0   :  { %1549 = vmatpush3.msra.mxu0 %v1356_v13  ;;  %1641 = vmatpush3.msra.mxu1 %v1356_v13 }
  0xf1   :  { %1550 = vmatprep.subr.mxu0 %v1371_v36  ;;  %1626 = vmatprep.subr.mxu1 %v1371_v36 }
  0xf2   :  { %1551 = vmatpush3.msra.mxu0 %v1355_v37  ;;  %1642 = vmatpush3.msra.mxu1 %v1355_v37 }
  0xf3   :  { %1552 = vmatprep.subr.mxu0 %v1370_v38  ;;  %1627 = vmatprep.subr.mxu1 %v1370_v38 }
  0xf4   :  { %1553 = vmatpush3.msra.mxu0 %v1354_v39  ;;  %1643 = vmatpush3.msra.mxu1 %v1354_v39 }
  0xf5   :  { %1554 = vmatprep.subr.mxu0 %v1369_v8  ;;  %1628 = vmatprep.subr.mxu1 %v1369_v8 }
  0xf6   :  { %1555 = vmatpush3.msra.mxu0 %v1353_v55  ;;  %1644 = vmatpush3.msra.mxu1 %v1353_v55 }
  0xf7   :  { %1556 = vmatprep.subr.mxu0 %v1368_v60  ;;  %1629 = vmatprep.subr.mxu1 %v1368_v60 }
  0xf8   :  { %1557 = vmatpush3.msra.mxu0 %v1352_v61  ;;  %1645 = vmatpush3.msra.mxu1 %v1352_v61 }
  0xf9   :  { %1558 = vmatprep.subr.mxu0 %v1367_v54  ;;  %1630 = vmatprep.subr.mxu1 %v1367_v54 }
  0xfa   :  { %1559 = vmatpush3.msra.mxu0 %v1351_v23  ;;  %1646 = vmatpush3.msra.mxu1 %v1351_v23 }
  0xfb   :  { %1560 = vmatprep.subr.mxu0 %v1366_v11  ;;  %1631 = vmatprep.subr.mxu1 %v1366_v11 }
  0xfc   :  { %1561 = vmatpush3.msra.mxu0 %v1350_v51  ;;  %1647 = vmatpush3.msra.mxu1 %v1350_v51 }
  0xfd   :  { %1562 = vmatprep.subr.mxu0 %v1365_v44  ;;  %1632 = vmatprep.subr.mxu1 %v1365_v44 }
  0xfe   :  { %1563 = vmatpush3.msra.mxu0 %v1349_v45  ;;  %1648 = vmatpush3.msra.mxu1 %v1349_v45 }
  0xff   :  { %1564 = vmatprep.subr.mxu0 %v1364_v56  ;;  %1633 = vmatprep.subr.mxu1 %v1364_v56 }
 0x100   :  { %1565 = vmatpush3.msra.mxu0 %v1348_v59  ;;  %1649 = vmatpush3.msra.mxu1 %v1348_v59 }
 0x101   :  { %1566 = vmatprep.subr.mxu0 %v1363_v0  ;;  %1634 = vmatprep.subr.mxu1 %v1363_v0 }
 0x102   :  { %1567 = vmatpush3.msra.mxu0 %v1347_v2  ;;  %1650 = vmatpush3.msra.mxu1 %v1347_v2 }
 0x103   :  { %1568 = vmatprep.subr.mxu0 %v1362_v3  ;;  %1635 = vmatprep.subr.mxu1 %v1362_v3 }
 0x104   :  { %1569 = vmatpush3.msra.mxu0 %v1346_v5  ;;  %1651 = vmatpush3.msra.mxu1 %v1346_v5 }
 0x105   :  { %1570 = vmatprep.subr.mxu0 %v1361_v6  ;;  %1636 = vmatprep.subr.mxu1 %v1361_v6 }
 0x106   :  { %1571 = vmatpush3.msra.mxu0 %v1345_v7  ;;  %1652 = vmatpush3.msra.mxu1 %v1345_v7 }
 0x107   :  { %1572 = vmatprep.subr.mxu0 %v1360_v14  ;;  %1637 = vmatprep.subr.mxu1 %v1360_v14 }
 0x108   :  { %1573 = vmatpush3.msra.mxu0 %v1344_v15  ;;  %1653 = vmatpush3.msra.mxu1 %v1344_v15 }
 0x110   :  { %v446_v18 = vpop.f32.mrf.mxu0  ;;  %v607_v19 = vpop.f32.mrf.mxu1 }
 0x111   :  { %v2345_v20 = vadd.f32 %v607_v19, %v446_v18 }
 0x112   :  { %v448_v21 = vpop.f32.mrf.mxu0  ;;  %v609_v28 = vpop.f32.mrf.mxu1 }
 0x113   :  { %v2347_v29 = vadd.f32 %v609_v28, %v448_v21 }
 0x116   :  { %v452_v32 = vpop.f32.mrf.mxu0  ;;  %v613_v33 = vpop.f32.mrf.mxu1 }
 0x117   :  { %v2349_v34 = vadd.f32 %v613_v33, %v452_v32 }
 0x118   :  { %v454_v35 = vpop.f32.mrf.mxu0  ;;  %v615_v42 = vpop.f32.mrf.mxu1 }
 0x119   :  { %v2351_v43 = vadd.f32 %v615_v42, %v454_v35 }
 0x11c   :  { %v458_v46 = vpop.f32.mrf.mxu0  ;;  %v619_v47 = vpop.f32.mrf.mxu1 }
 0x11d   :  { %v2353_v48 = vadd.f32 %v619_v47, %v458_v46 }
 0x11e   :  { %v460_v49 = vpop.f32.mrf.mxu0  ;;  %v621_v57 = vpop.f32.mrf.mxu1 }
 0x11f   :  { %v2355_v58 = vadd.f32 %v621_v57, %v460_v49 }
 0x122   :  { %v464_v1 = vpop.f32.mrf.mxu0  ;;  %v625_v4 = vpop.f32.mrf.mxu1 }
 0x123   :  { %v2357_v16 = vadd.f32 %v625_v4, %v464_v1 }
 0x124   :  { %v466_v26 = vpop.f32.mrf.mxu0  ;;  %v627_v27 = vpop.f32.mrf.mxu1 }
 0x125   :  { %v2359_v41 = vadd.f32 %v627_v27, %v466_v26 }
 0x128   :  { %v470_v52 = vpop.f32.mrf.mxu0  ;;  %v631_v53 = vpop.f32.mrf.mxu1 }
 0x129   :  { %v2361_v22 = vadd.f32 %v631_v53, %v470_v52 }
 0x12a   :  { %v472_v30 = vpop.f32.mrf.mxu0  ;;  %v633_v31 = vpop.f32.mrf.mxu1 }
 0x12b   :  { %v2363_v10 = vadd.f32 %v633_v31, %v472_v30 }
 0x12e   :  { %v476_v9 = vpop.f32.mrf.mxu0  ;;  %v637_v12 = vpop.f32.mrf.mxu1 }
 0x12f   :  { %v2365_v50 = vadd.f32 %v637_v12, %v476_v9 }
 0x130   :  { %v478_v40 = vpop.f32.mrf.mxu0  ;;  %v639_v63 = vpop.f32.mrf.mxu1 }
 0x131   :  { %v2367_v17 = vadd.f32 %v639_v63, %v478_v40 }
 0x134   :  { %v482_v62 = vpop.f32.mrf.mxu0  ;;  %v643_v24 = vpop.f32.mrf.mxu1 }
 0x135   :  { %v2369_v25 = vadd.f32 %v643_v24, %v482_v62 }
 0x136   :  { %v484_v13 = vpop.f32.mrf.mxu0  ;;  %v645_v36 = vpop.f32.mrf.mxu1 }
 0x137   :  { %v2371_v37 = vadd.f32 %v645_v36, %v484_v13 }
 0x13a   :  { %v488_v38 = vpop.f32.mrf.mxu0  ;;  %v649_v39 = vpop.f32.mrf.mxu1 }
 0x13b   :  { %v2373_v8 = vadd.f32 %v649_v39, %v488_v38 }
 0x13c   :  { %v490_v55 = vpop.f32.mrf.mxu0  ;;  %v651_v60 = vpop.f32.mrf.mxu1 }
 0x13d   :  { %v2375_v61 = vadd.f32 %v651_v60, %v490_v55 }
 0x140   :  { %v494_v54 = vpop.f32.mrf.mxu0  ;;  %v655_v23 = vpop.f32.mrf.mxu1 }
 0x141   :  { %v2377_v11 = vadd.f32 %v655_v23, %v494_v54 }
 0x142   :  { %v496_v51 = vpop.f32.mrf.mxu0  ;;  %v657_v44 = vpop.f32.mrf.mxu1 }
 0x143   :  { %v2379_v45 = vadd.f32 %v657_v44, %v496_v51 }
 0x146   :  { %v500_v56 = vpop.f32.mrf.mxu0  ;;  %v661_v59 = vpop.f32.mrf.mxu1 }
 0x147   :  { %v2381_v0 = vadd.f32 %v661_v59, %v500_v56  ;;  %v1024_v59 = vmul.f32 %v2345_v20, %v2345_v20 }
 0x148   :  { %v502_v2 = vpop.f32.mrf.mxu0  ;;  %v663_v3 = vpop.f32.mrf.mxu1 }
 0x149   :  { %v2383_v5 = vadd.f32 %v663_v3, %v502_v2 }
 0x14c   :  { %v506_v6 = vpop.f32.mrf.mxu0  ;;  %v667_v7 = vpop.f32.mrf.mxu1 }
 0x14d   :  { %v2385_v14 = vadd.f32 %v667_v7, %v506_v6  ;;  %v1025_v6 = vmul.f32 %v2347_v29, %v2347_v29  ;;  %v1026_v7 = vmul.f32 %v2349_v34, %v2349_v34  ;;  %v1030_v29 = vmul.f32 %v2357_v16, %v2357_v16 }
 0x14e   :  { %v508_v15 = vpop.f32.mrf.mxu0  ;;  %v669_v18 = vpop.f32.mrf.mxu1  ;;  %v2427_v34 = vmul.f32 %v2359_v41, %v2359_v41  ;;  %v2442_v41 = vmul.f32 %v2365_v50, %v2365_v50 }
 0x14f   :  { %v2387_v19 = vadd.f32 %v669_v18, %v508_v15  ;;  %v1027_v15 = vmul.f32 %v2351_v43, %v2351_v43  ;;  %v1028_v18 = vmul.f32 %v2353_v48, %v2353_v48  ;;  %v2431_v43 = vmul.f32 %v2361_v22, %v2361_v22 }
 0x150   :  { %v2435_v48 = vmul.f32 %v2363_v10, %v2363_v10  ;;  %v2446_v22 = vmul.f32 %v2367_v17, %v2367_v17  ;;  %v2450_v10 = vmul.f32 %v2369_v25, %v2369_v25  ;;  %v2461_v17 = vmul.f32 %v2373_v8, %v2373_v8 }
 0x151   :  { %v2465_v25 = vmul.f32 %v2375_v61, %v2375_v61  ;;  %v2480_v61 = vmul.f32 %v2381_v0, %v2381_v0 }
 0x152   :  { %v512_v21 = vpop.f32.mrf.mxu0  ;;  %v673_v28 = vpop.f32.mrf.mxu1 }
 0x153   :  { %v2389_v32 = vadd.f32 %v673_v28, %v512_v21 }
 0x154   :  { %v514_v33 = vpop.f32.mrf.mxu0  ;;  %v675_v35 = vpop.f32.mrf.mxu1 }
 0x155   :  { %v2391_v42 = vadd.f32 %v675_v35, %v514_v33  ;;  %v1029_v33 = vmul.f32 %v2355_v58, %v2355_v58 }
 0x158   :  { %v518_v46 = vpop.f32.mrf.mxu0  ;;  %v679_v47 = vpop.f32.mrf.mxu1 }
 0x159   :  { %v2393_v49 = vadd.f32 %v679_v47, %v518_v46 }
 0x15a   :  { %v520_v57 = vpop.f32.mrf.mxu0  ;;  %v681_v1 = vpop.f32.mrf.mxu1 }
 0x15b   :  { %v2395_v4 = vadd.f32 %v681_v1, %v520_v57 }
 0x15e   :  { %v524_v26 = vpop.f32.mrf.mxu0  ;;  %v685_v27 = vpop.f32.mrf.mxu1 }
 0x15f   :  { %v2397_v52 = vadd.f32 %v685_v27, %v524_v26  ;;  %v2454_v26 = vmul.f32 %v2371_v37, %v2371_v37  ;;  %v2469_v37 = vmul.f32 %v2377_v11, %v2377_v11  ;;  %v2484_v11 = vmul.f32 %v2383_v5, %v2383_v5 }
 0x160   :  { %v526_v53 = vpop.f32.mrf.mxu0  ;;  %v687_v30 = vpop.f32.mrf.mxu1  ;;  %v2499_v5 = vmul.f32 %v2389_v32, %v2389_v32 }
 0x161   :  { %v2399_v31 = vadd.f32 %v687_v30, %v526_v53 }
 0x164   :  { %v530_v9 = vpop.f32.mrf.mxu0  ;;  %v691_v12 = vpop.f32.mrf.mxu1 }
 0x165   :  { %v2401_v40 = vadd.f32 %v691_v12, %v530_v9  ;;  %v2473_v12 = vmul.f32 %v2379_v45, %v2379_v45  ;;  %v2488_v45 = vmul.f32 %v2385_v14, %v2385_v14  ;;  %v2503_v14 = vmul.f32 %v2391_v42, %v2391_v42 }
 0x166   :  { %v532_v63 = vpop.f32.mrf.mxu0  ;;  %v693_v62 = vpop.f32.mrf.mxu1  ;;  %v2518_v42 = vmul.f32 %v2397_v52, %v2397_v52 }
 0x167   :  { %v2403_v24 = vadd.f32 %v693_v62, %v532_v63 }
 0x16a   :  { %v536_v13 = vpop.f32.mrf.mxu0  ;;  %v697_v36 = vpop.f32.mrf.mxu1 }
 0x16b   :  { %v2405_v38 = vadd.f32 %v697_v36, %v536_v13 }
 0x16c   :  { %v538_v39 = vpop.f32.mrf.mxu0  ;;  %v699_v55 = vpop.f32.mrf.mxu1 }
 0x16d   :  { %v2407_v60 = vadd.f32 %v699_v55, %v538_v39  ;;  %v2492_v39 = vmul.f32 %v2387_v19, %v2387_v19  ;;  %v2507_v19 = vmul.f32 %v2393_v49, %v2393_v49  ;;  %v2522_v49 = vmul.f32 %v2399_v31, %v2399_v31 }
 0x16e   :  { %v2537_v31 = vmul.f32 %v2405_v38, %v2405_v38 }
 0x170   :  { %v768_v54 = vpop.f32.mrf.mxu0  ;;  %v929_v23 = vpop.f32.mrf.mxu1 }
 0x171   :  { %v930_v51 = vadd.f32 %v929_v23, %v768_v54 }
 0x172   :  { %v770_v44 = vpop.f32.mrf.mxu0  ;;  %v931_v56 = vpop.f32.mrf.mxu1 }
 0x173   :  { %v1056_v2 = vmul.f32 %v930_v51, %v930_v51  ;;  %v932_v3 = vadd.f32 %v931_v56, %v770_v44  ;;  %v2511_v44 = vmul.f32 %v2395_v4, %v2395_v4  ;;  %v2526_v4 = vmul.f32 %v2401_v40, %v2401_v40 }
 0x174   :  { %v774_v21 = vpop.f32.mrf.mxu0  ;;  %v935_v28 = vpop.f32.mrf.mxu1  ;;  %v2541_v40 = vmul.f32 %v2407_v60, %v2407_v60 }
 0x175   :  { %v2421_v20 = vadd.f32 %v1056_v2, %v1024_v59  ;;  %v1057_v35 = vmul.f32 %v932_v3, %v932_v3  ;;  %v936_v46 = vadd.f32 %v935_v28, %v774_v21 }
 0x176   :  { %v776_v58 = vpop.f32.mrf.mxu0  ;;  %v937_v47 = vpop.f32.mrf.mxu1 }
 0x177   :  { %1657 = vrsqrt.f32 %v2421_v20  ;;  %v2438_v57 = vadd.f32 %v1057_v35, %v1025_v6  ;;  %v1058_v1 = vmul.f32 %v936_v46, %v936_v46  ;;  %v938_v16 = vadd.f32 %v937_v47, %v776_v58 }
 0x178   :  { %v780_v27 = vpop.f32.mrf.mxu0  ;;  %v941_v53 = vpop.f32.mrf.mxu1  ;;  %v2530_v6 = vmul.f32 %v2403_v24, %v2403_v24  ;;  %vm1122_vm0 = vcmp.eq.f32.partialorder %v2421_v20, inf  ;;  %v1125_v24 = vand.u32 2147483648, %v2421_v20  ;;  %vm1124_vm1 = vcmp.eq.f32.partialorder %v2421_v20, 0.0 }
 0x179   :  { %1659 = vrsqrt.f32 %v2438_v57  ;;  %v2457_v30 = vadd.f32 %v1058_v1, %v1026_v7  ;;  %v1059_v50 = vmul.f32 %v938_v16, %v938_v16  ;;  %v942_v9 = vadd.f32 %v941_v53, %v780_v27 }
 0x17a   :  { %v782_v63 = vpop.f32.mrf.mxu0  ;;  %v943_v62 = vpop.f32.mrf.mxu1  ;;  %vm1129_vm2 = vcmp.eq.f32.partialorder %v2438_v57, inf  ;;  %vm1131_vm3 = vcmp.eq.f32.partialorder %v2438_v57, 0.0  ;;  %v1132_v60 = vand.u32 2147483648, %v2438_v57 }
 0x17b   :  { %1661 = vrsqrt.f32 %v2457_v30  ;;  %v2476_v13 = vadd.f32 %v1059_v50, %v1027_v15  ;;  %v1060_v8 = vmul.f32 %v942_v9, %v942_v9  ;;  %v944_v36 = vadd.f32 %v943_v62, %v782_v63 }
 0x17c   :  { %v786_v55 = vpop.f32.mrf.mxu0  ;;  %v947_v54 = vpop.f32.mrf.mxu1  ;;  %vm1136_vm4 = vcmp.eq.f32.partialorder %v2457_v30, inf  ;;  %v1139_v62 = vand.u32 2147483648, %v2457_v30  ;;  %vm1138_vm7 = vcmp.eq.f32.partialorder %v2457_v30, 0.0 }
 0x17d   :  { %1663 = vrsqrt.f32 %v2476_v13  ;;  %v2495_v23 = vadd.f32 %v1060_v8, %v1028_v18  ;;  %v1061_v0 = vmul.f32 %v944_v36, %v944_v36  ;;  %v948_v51 = vadd.f32 %v947_v54, %v786_v55 }
 0x17e   :  { %v788_v56 = vpop.f32.mrf.mxu0  ;;  %v949_v59 = vpop.f32.mrf.mxu1  ;;  %vm1143_vm5 = vcmp.eq.f32.partialorder %v2476_v13, inf  ;;  %v1146_v63 = vand.u32 2147483648, %v2476_v13  ;;  %vm1145_vm6 = vcmp.eq.f32.partialorder %v2476_v13, 0.0 }
 0x17f   :  { %1665 = vrsqrt.f32 %v2495_v23  ;;  %v2514_v2 = vadd.f32 %v1061_v0, %v1029_v33  ;;  %v1062_v32 = vmul.f32 %v948_v51, %v948_v51  ;;  %v950_v3 = vadd.f32 %v949_v59, %v788_v56 }
 0x180   :  { %v792_v7 = vpop.f32.mrf.mxu0  ;;  %v953_v15 = vpop.f32.mrf.mxu1  ;;  %vm1150_vm8 = vcmp.eq.f32.partialorder %v2495_v23, inf  ;;  %vm1152_vm11 = vcmp.eq.f32.partialorder %v2495_v23, 0.0 }
 0x181   :  { %1667 = vrsqrt.f32 %v2514_v2  ;;  %v2533_v18 = vadd.f32 %v1062_v32, %v1030_v29  ;;  %v1063_v52 = vmul.f32 %v950_v3, %v950_v3  ;;  %v954_v21 = vadd.f32 %v953_v15, %v792_v7 }
 0x182   :  { %v794_v28 = vpop.f32.mrf.mxu0  ;;  %v955_v33 = vpop.f32.mrf.mxu1  ;;  %vm1157_vm9 = vcmp.eq.f32.partialorder %v2514_v2, inf  ;;  %vm1159_vm10 = vcmp.eq.f32.partialorder %v2514_v2, 0.0 }
 0x183   :  { %1669 = vrsqrt.f32 %v2533_v18  ;;  %v2547_v35 = vadd.f32 %v1063_v52, %v2427_v34  ;;  %v1064_v46 = vmul.f32 %v954_v21, %v954_v21  ;;  %v956_v29 = vadd.f32 %v955_v33, %v794_v28 }
 0x184   :  { %v1658_v38 = vpop.eup %1657  ;;  %v798_v58 = vpop.f32.mrf.mxu0  ;;  %v1160_v33 = vand.u32 2147483648, %v2514_v2  ;;  %vm1164_vm12 = vcmp.eq.f32.partialorder %v2533_v18, inf  ;;  %vm1166_vm13 = vcmp.eq.f32.partialorder %v2533_v18, 0.0 }
 0x185   :  { %v959_v47 = vpop.f32.mrf.mxu1  ;;  %1671 = vrsqrt.f32 %v2547_v35  ;;  %v2556_v34 = vadd.f32 %v1064_v46, %v2431_v43  ;;  %v1065_v1 = vmul.f32 %v956_v29, %v956_v29  ;;  %v1121_v9 = vmul.f32 %v1658_v38, %v2421_v20 }
 0x186   :  { %v960_v16 = vadd.f32 %v959_v47, %v798_v58  ;;  %v1660_v27 = vpop.eup %1659  ;;  %v800_v53 = vpop.f32.mrf.mxu0  ;;  %v1167_v46 = vand.u32 2147483648, %v2533_v18  ;;  %vm1171_vm14 = vcmp.eq.f32.partialorder %v2547_v35, inf  ;;  %vm1173_vm15 = vcmp.eq.f32.partialorder %v2547_v35, 0.0 }
 0x187   :  { %v961_v50 = vpop.f32.mrf.mxu1  ;;  %1673 = vrsqrt.f32 %v2556_v34  ;;  %v2564_v8 = vadd.f32 %v1065_v1, %v2435_v48  ;;  %v1128_v51 = vmul.f32 %v1660_v27, %v2438_v57  ;;  %v1123_v56 = vsel %vm1122_vm0, %v2421_v20, %v1121_v9 }
 0x188   :  { %v1066_v43 = vmul.f32 %v960_v16, %v960_v16  ;;  %v962_v36 = vadd.f32 %v961_v50, %v800_v53  ;;  %v1662_v55 = vpop.eup %1661  ;;  %v804_v54 = vpop.f32.mrf.mxu0  ;;  %v1153_v48 = vand.u32 2147483648, %v2495_v23  ;;  %v1126_v27 = vsel %vm1124_vm1, %v1125_v24, %v1123_v56 }
 0x189   :  { %v965_v0 = vpop.f32.mrf.mxu1  ;;  %1675 = vrsqrt.f32 %v2564_v8  ;;  %v1130_v21 = vsel %vm1129_vm2, %v2438_v57, %v1128_v51  ;;  %v1135_v28 = vmul.f32 %v1662_v55, %v2457_v30  ;;  %vm1178_vm0 = vcmp.eq.f32.partialorder %v2556_v34, inf }
 0x18a   :  { %v2576_v59 = vadd.f32 %v1066_v43, %v2442_v41  ;;  %v1067_v32 = vmul.f32 %v962_v36, %v962_v36  ;;  %v966_v3 = vadd.f32 %v965_v0, %v804_v54  ;;  %v1664_v7 = vpop.eup %1663  ;;  %v806_v15 = vpop.f32.mrf.mxu0  ;;  %v1133_v47 = vsel %vm1131_vm3, %v1132_v60, %v1130_v21 }
 0x18b   :  { %v967_v52 = vpop.f32.mrf.mxu1  ;;  %v1137_v53 = vsel %vm1136_vm4, %v2457_v30, %v1135_v28  ;;  %1440 = vmatprep.mubr.f32.mxu0 %v1133_v47  ;;  %vm1185_vm1 = vcmp.eq.f32.partialorder %v2564_v8, inf  ;;  %vm1180_vm2 = vcmp.eq.f32.partialorder %v2556_v34, 0.0  ;;  %vm1187_vm3 = vcmp.eq.f32.partialorder %v2564_v8, 0.0 }
 0x18c   :  { %1677 = vrsqrt.f32 %v2576_v59  ;;  %v2587_v41 = vadd.f32 %v1067_v32, %v2446_v22  ;;  %v1068_v29 = vmul.f32 %v966_v3, %v966_v3  ;;  %v968_v38 = vadd.f32 %v967_v52, %v806_v15  ;;  %v1666_v58 = vpop.eup %1665  ;;  %v810_v1 = vpop.f32.mrf.mxu0  ;;  %1441 = vmatmul.mubr.f32.vlgmr.msra.gmra.mxu0 %v1126_v27 }
 0x18d   :  { %v971_v16 = vpop.f32.mrf.mxu1  ;;  %v1142_v22 = vmul.f32 %v1664_v7, %v2476_v13  ;;  %v1149_v36 = vmul.f32 %v1666_v58, %v2495_v23 }
 0x18e   :  { %1679 = vrsqrt.f32 %v2587_v41  ;;  %v2602_v50 = vadd.f32 %v1068_v29, %v2450_v10  ;;  %v1069_v9 = vmul.f32 %v968_v38, %v968_v38  ;;  %v972_v57 = vadd.f32 %v971_v16, %v810_v1  ;;  %v1668_v60 = vpop.eup %1667  ;;  %v812_v20 = vpop.f32.mrf.mxu0 }
 0x18f   :  { %v973_v24 = vpop.f32.mrf.mxu1  ;;  %v1144_v43 = vsel %vm1143_vm5, %v2476_v13, %v1142_v22  ;;  %v1174_v10 = vand.u32 2147483648, %v2547_v35  ;;  %v1156_v7 = vmul.f32 %v1668_v60, %v2514_v2  ;;  %v1151_v21 = vsel %vm1150_vm8, %v2495_v23, %v1149_v36 }
 0x190   :  { %v2612_v55 = vadd.f32 %v1069_v9, %v2454_v26  ;;  %v1070_v54 = vmul.f32 %v972_v57, %v972_v57  ;;  %v974_v0 = vadd.f32 %v973_v24, %v812_v20  ;;  %v1670_v51 = vpop.eup %1669  ;;  %1681 = vrsqrt.f32 %v2602_v50  ;;  %v816_v32 = vpop.f32.mrf.mxu0 }
 0x191   :  { %v1147_v56 = vsel %vm1145_vm6, %v1146_v63, %v1144_v43  ;;  %v977_v3 = vpop.f32.mrf.mxu1  ;;  %v1140_v26 = vsel %vm1138_vm7, %v1139_v62, %v1137_v53  ;;  %v1158_v28 = vsel %vm1157_vm9, %v2514_v2, %v1156_v7  ;;  %v1163_v29 = vmul.f32 %v1670_v51, %v2533_v18 }
 0x192   :  { %1683 = vrsqrt.f32 %v2612_v55  ;;  %v1071_v15 = vmul.f32 %v974_v0, %v974_v0  ;;  %1445 = vmatprep.mubr.f32.mxu0 %v1147_v56  ;;  %v978_v52 = vadd.f32 %v977_v3, %v816_v32  ;;  %v1672_v13 = vpop.eup %1671  ;;  %v2633_v63 = vadd.f32 %v1070_v54, %v2461_v17  ;;  %v818_v30 = vpop.f32.mrf.mxu0 }
 0x193   :  { %1446 = vmatmul.mubr.f32.gmra.mxu0 %v1140_v26  ;;  %v979_v62 = vpop.f32.mrf.mxu1  ;;  %v1188_v38 = vand.u32 2147483648, %v2564_v8  ;;  %v1181_v17 = vand.u32 2147483648, %v2556_v34  ;;  %v1161_v27 = vsel %vm1159_vm10, %v1160_v33, %v1158_v28  ;;  %v1170_v9 = vmul.f32 %v1672_v13, %v2547_v35 }
 0x194   :  { %v2641_v58 = vadd.f32 %v1071_v15, %v2465_v25  ;;  %v1072_v47 = vmul.f32 %v978_v52, %v978_v52  ;;  %v980_v1 = vadd.f32 %v979_v62, %v818_v30  ;;  %v1674_v16 = vpop.eup %1673  ;;  %v822_v22 = vpop.f32.mrf.mxu0  ;;  %v1154_v25 = vsel %vm1152_vm11, %v1153_v48, %v1151_v21  ;;  %1450 = vmatprep.mubr.f32.mxu0 %v1161_v27 }
 0x195   :  { %v983_v53 = vpop.f32.mrf.mxu1  ;;  %v1165_v57 = vsel %vm1164_vm12, %v2533_v18, %v1163_v29  ;;  %vm1199_vm4 = vcmp.eq.f32.partialorder %v2587_v41, inf  ;;  %v1172_v24 = vsel %vm1171_vm14, %v2547_v35, %v1170_v9  ;;  %v1177_v43 = vmul.f32 %v1674_v16, %v2556_v34 }
 0x196   :  { %1685 = vrsqrt.f32 %v2641_v58  ;;  %v2659_v60 = vadd.f32 %v1072_v47, %v2469_v37  ;;  %v1073_v2 = vmul.f32 %v980_v1, %v980_v1  ;;  %v984_v33 = vadd.f32 %v983_v53, %v822_v22  ;;  %v1676_v20 = vpop.eup %1675  ;;  %v824_v23 = vpop.f32.mrf.mxu0 }
 0x197   :  { %1687 = vrsqrt.f32 %v2633_v63  ;;  %1451 = vmatmul.mubr.f32.gmra.mxu0 %v1154_v25  ;;  %v985_v48 = vpop.f32.mrf.mxu1  ;;  %v1168_v37 = vsel %vm1166_vm13, %v1167_v46, %v1165_v57  ;;  %vm1201_vm5 = vcmp.eq.f32.partialorder %v2587_v41, 0.0  ;;  %v1202_v51 = vand.u32 2147483648, %v2587_v41 }
 0x198   :  { %v2672_v36 = vadd.f32 %v1073_v2, %v2473_v12  ;;  %v1074_v54 = vmul.f32 %v984_v33, %v984_v33  ;;  %v986_v0 = vadd.f32 %v985_v48, %v824_v23  ;;  %1689 = vrsqrt.f32 %v2659_v60  ;;  %v828_v3 = vpop.f32.mrf.mxu0 }
 0x199   :  { %v1678_v56 = vpop.eup %1677  ;;  %v1175_v32 = vsel %vm1173_vm15, %v1174_v10, %v1172_v24  ;;  %v989_v18 = vpop.f32.mrf.mxu1  ;;  %v1184_v46 = vmul.f32 %v1676_v20, %v2564_v8  ;;  %v1179_v12 = vsel %vm1178_vm0, %v2556_v34, %v1177_v43  ;;  %vm1192_vm6 = vcmp.eq.f32.partialorder %v2576_v59, inf }
 0x19a   :  { %v2684_v26 = vadd.f32 %v1074_v54, %v2480_v61  ;;  %v1075_v7 = vmul.f32 %v986_v0, %v986_v0  ;;  %1455 = vmatprep.mubr.f32.mxu0 %v1175_v32  ;;  %v990_v15 = vadd.f32 %v989_v18, %v828_v3  ;;  %1691 = vrsqrt.f32 %v2672_v36  ;;  %v830_v35 = vpop.f32.mrf.mxu0 }
 0x19b   :  { %v1680_v52 = vpop.eup %1679  ;;  %1456 = vmatmul.mubr.f32.gmra.mxu0 %v1168_v37  ;;  %v991_v10 = vpop.f32.mrf.mxu1  ;;  %v1186_v21 = vsel %vm1185_vm1, %v2564_v8, %v1184_v46  ;;  %v1182_v13 = vsel %vm1180_vm2, %v1181_v17, %v1179_v12  ;;  %v1191_v61 = vmul.f32 %v1678_v56, %v2576_v59  ;;  %vm1194_vm7 = vcmp.eq.f32.partialorder %v2576_v59, 0.0 }
 0x19c   :  { %v2695_v30 = vadd.f32 %v1075_v7, %v2484_v11  ;;  %v1076_v62 = vmul.f32 %v990_v15, %v990_v15  ;;  %v992_v28 = vadd.f32 %v991_v10, %v830_v35  ;;  %v1189_v29 = vsel %vm1187_vm3, %v1188_v38, %v1186_v21  ;;  %v834_v47 = vpop.f32.mrf.mxu0 }
 0x19d   :  { %v995_v1 = vpop.f32.mrf.mxu1  ;;  %v1198_v16 = vmul.f32 %v1680_v52, %v2587_v41  ;;  %v1193_v34 = vsel %vm1192_vm6, %v2576_v59, %v1191_v61  ;;  %v1195_v17 = vand.u32 2147483648, %v2576_v59  ;;  %v1682_v27 = vpop.eup %1681  ;;  %1693 = vrsqrt.f32 %v2684_v26  ;;  %1460 = vmatprep.mubr.f32.mxu0 %v1189_v29 }
 0x19e   :  { %v2707_v11 = vadd.f32 %v1076_v62, %v2488_v45  ;;  %v1077_v22 = vmul.f32 %v992_v28, %v992_v28  ;;  %v996_v8 = vadd.f32 %v995_v1, %v834_v47  ;;  %1695 = vrsqrt.f32 %v2695_v30  ;;  %v836_v53 = vpop.f32.mrf.mxu0 }
 0x19f   :  { %v1684_v38 = vpop.eup %1683  ;;  %1461 = vmatmul.mubr.f32.gmra.mxu0 %v1182_v13  ;;  %v997_v25 = vpop.f32.mrf.mxu1  ;;  %v1200_v9 = vsel %vm1199_vm4, %v2587_v41, %v1198_v16  ;;  %v1196_v57 = vsel %vm1194_vm7, %v1195_v17, %v1193_v34  ;;  %vm1213_vm8 = vcmp.eq.f32.partialorder %v2612_v55, inf  ;;  %vm1215_vm9 = vcmp.eq.f32.partialorder %v2612_v55, 0.0 }
 0x1a0   :  { %v2717_v45 = vadd.f32 %v1077_v22, %v2492_v39  ;;  %v1078_v2 = vmul.f32 %v996_v8, %v996_v8  ;;  %v998_v33 = vadd.f32 %v997_v25, %v836_v53  ;;  %1697 = vrsqrt.f32 %v2707_v11  ;;  %v840_v23 = vpop.f32.mrf.mxu0 }
 0x1a1   :  { %v1203_v20 = vsel %vm1201_vm5, %v1202_v51, %v1200_v9  ;;  %v1001_v48 = vpop.f32.mrf.mxu1  ;;  %v1212_v24 = vmul.f32 %v1684_v38, %v2612_v55  ;;  %v1205_v59 = vmul.f32 %v1682_v27, %v2602_v50  ;;  %v1216_v54 = vand.u32 2147483648, %v2612_v55 }
 0x1a2   :  { %v2726_v37 = vadd.f32 %v1078_v2, %v2499_v5  ;;  %v1079_v39 = vmul.f32 %v998_v33, %v998_v33  ;;  %1465 = vmatprep.mubr.f32.mxu0 %v1203_v20  ;;  %v1002_v43 = vadd.f32 %v1001_v48, %v840_v23  ;;  %1699 = vrsqrt.f32 %v2717_v45  ;;  %v842_v41 = vpop.f32.mrf.mxu0 }
 0x1a3   :  { %v1686_v0 = vpop.eup %1685  ;;  %1466 = vmatmul.mubr.f32.gmra.mxu0 %v1196_v57  ;;  %v1003_v51 = vpop.f32.mrf.mxu1  ;;  %v1214_v56 = vsel %vm1213_vm8, %v2612_v55, %v1212_v24  ;;  %vm1206_vm10 = vcmp.eq.f32.partialorder %v2602_v50, inf  ;;  %vm1208_vm11 = vcmp.eq.f32.partialorder %v2602_v50, 0.0  ;;  %v1209_v46 = vand.u32 2147483648, %v2602_v50 }
 0x1a4   :  { %v1688_v5 = vpop.eup %1687  ;;  %v2736_v32 = vadd.f32 %v1079_v39, %v2503_v14  ;;  %v1080_v3 = vmul.f32 %v1002_v43, %v1002_v43  ;;  %v1004_v18 = vadd.f32 %v1003_v51, %v842_v41  ;;  %1701 = vrsqrt.f32 %v2726_v37  ;;  %v846_v7 = vpop.f32.mrf.mxu0 }
 0x1a5   :  { %v1217_v12 = vsel %vm1215_vm9, %v1216_v54, %v1214_v56  ;;  %v1007_v15 = vpop.f32.mrf.mxu1  ;;  %v1207_v52 = vsel %vm1206_vm10, %v2602_v50, %v1205_v59  ;;  %v1226_v35 = vmul.f32 %v1686_v0, %v2641_v58  ;;  %v1690_v10 = vpop.eup %1689  ;;  %vm1227_vm12 = vcmp.eq.f32.partialorder %v2641_v58, inf }
 0x1a6   :  { %v2745_v21 = vadd.f32 %v1080_v3, %v2507_v19  ;;  %v1081_v14 = vmul.f32 %v1004_v18, %v1004_v18  ;;  %1470 = vmatprep.mubr.f32.mxu0 %v1217_v12  ;;  %v1008_v13 = vadd.f32 %v1007_v15, %v846_v7  ;;  %1703 = vrsqrt.f32 %v2736_v32  ;;  %v848_v61 = vpop.f32.mrf.mxu0 }
 0x1a7   :  { %v1210_v55 = vsel %vm1208_vm11, %v1209_v46, %v1207_v52  ;;  %v1009_v62 = vpop.f32.mrf.mxu1  ;;  %v1228_v28 = vsel %vm1227_vm12, %v2641_v58, %v1226_v35  ;;  %v1230_v29 = vand.u32 2147483648, %v2641_v58  ;;  %v1692_v47 = vpop.eup %1691  ;;  %vm1229_vm13 = vcmp.eq.f32.partialorder %v2641_v58, 0.0 }
 0x1a8   :  { %v2754_v19 = vadd.f32 %v1081_v14, %v2511_v44  ;;  %v1082_v1 = vmul.f32 %v1008_v13, %v1008_v13  ;;  %1471 = vmatmul.mubr.f32.gmra.mxu0 %v1210_v55  ;;  %v1010_v16 = vadd.f32 %v1009_v62, %v848_v61  ;;  %1705 = vrsqrt.f32 %v2745_v21  ;;  %v852_v50 = vpop.f32.mrf.mxu0 }
 0x1a9   :  { %v1231_v34 = vsel %vm1229_vm13, %v1230_v29, %v1228_v28  ;;  %v1013_v17 = vpop.f32.mrf.mxu1  ;;  %v1219_v27 = vmul.f32 %v1688_v5, %v2633_v63  ;;  %vm1220_vm14 = vcmp.eq.f32.partialorder %v2633_v63, inf  ;;  %vm1222_vm15 = vcmp.eq.f32.partialorder %v2633_v63, 0.0 }
 0x1aa   :  { %1707 = vrsqrt.f32 %v2754_v19  ;;  %v1083_v22 = vmul.f32 %v1010_v16, %v1010_v16  ;;  %1475 = vmatprep.mubr.f32.mxu0 %v1231_v34  ;;  %v1014_v44 = vadd.f32 %v1013_v17, %v852_v50  ;;  %v1694_v8 = vpop.eup %1693  ;;  %v2763_v38 = vadd.f32 %v1082_v1, %v2518_v42  ;;  %v854_v25 = vpop.f32.mrf.mxu0 }
 0x1ab   :  { %v1221_v58 = vsel %vm1220_vm14, %v2633_v63, %v1219_v27  ;;  %v1223_v53 = vand.u32 2147483648, %v2633_v63  ;;  %v1015_v9 = vpop.f32.mrf.mxu1  ;;  %v1240_v57 = vmul.f32 %v1692_v47, %v2672_v36  ;;  %v1696_v2 = vpop.eup %1695  ;;  %vm1241_vm0 = vcmp.eq.f32.partialorder %v2672_v36, inf }
 0x1ac   :  { %v2769_v33 = vadd.f32 %v1083_v22, %v2522_v49  ;;  %v1084_v20 = vmul.f32 %v1014_v44, %v1014_v44  ;;  %v1016_v23 = vadd.f32 %v1015_v9, %v854_v25  ;;  %vm1243_vm1 = vcmp.eq.f32.partialorder %v2672_v36, 0.0  ;;  %v858_v63 = vpop.f32.mrf.mxu0 }
 0x1ad   :  { %v1224_v48 = vsel %vm1222_vm15, %v1223_v53, %v1221_v58  ;;  %v1242_v42 = vsel %vm1241_vm0, %v2672_v36, %v1240_v57  ;;  %v1244_v24 = vand.u32 2147483648, %v2672_v36  ;;  %v1019_v59 = vpop.f32.mrf.mxu1  ;;  %v1698_v39 = vpop.eup %1697  ;;  %v1233_v41 = vmul.f32 %v1690_v10, %v2659_v60 }
 0x1ae   :  { %1709 = vrsqrt.f32 %v2769_v33  ;;  %v2777_v43 = vadd.f32 %v1084_v20, %v2526_v4  ;;  %1476 = vmatmul.mubr.f32.gmra.mxu0 %v1224_v48  ;;  %v1085_v49 = vmul.f32 %v1016_v23, %v1016_v23  ;;  %v1020_v54 = vadd.f32 %v1019_v59, %v858_v63  ;;  %v860_v51 = vpop.f32.mrf.mxu0 }
 0x1af   :  { %1711 = vrsqrt.f32 %v2763_v38  ;;  %v1245_v0 = vsel %vm1243_vm1, %v1244_v24, %v1242_v42  ;;  %vm1234_vm2 = vcmp.eq.f32.partialorder %v2659_v60, inf  ;;  %v1021_v36 = vpop.f32.mrf.mxu1  ;;  %v1700_v56 = vpop.eup %1699  ;;  %vm1236_vm3 = vcmp.eq.f32.partialorder %v2659_v60, 0.0 }
 0x1b0   :  { %v2783_v5 = vadd.f32 %v1085_v49, %v2530_v6  ;;  %1480 = vmatprep.mubr.f32.mxu1 %v1245_v0  ;;  %v1086_v3 = vmul.f32 %v1020_v54, %v1020_v54  ;;  %v1237_v4 = vand.u32 2147483648, %v2659_v60  ;;  %1713 = vrsqrt.f32 %v2777_v43 }
 0x1b1   :  { %v1235_v18 = vsel %vm1234_vm2, %v2659_v60, %v1233_v41  ;;  %v1022_v46 = vadd.f32 %v1021_v36, %v860_v51  ;;  %v1254_v12 = vmul.f32 %v1696_v2, %v2695_v30  ;;  %v1702_v7 = vpop.eup %1701  ;;  %vm1255_vm4 = vcmp.eq.f32.partialorder %v2695_v30, inf }
 0x1b2   :  { %1715 = vrsqrt.f32 %v2783_v5  ;;  %v2792_v15 = vadd.f32 %v1086_v3, %v2537_v31  ;;  %v1238_v6 = vsel %vm1236_vm3, %v1237_v4, %v1235_v18  ;;  %v1258_v10 = vand.u32 2147483648, %v2695_v30 }
 0x1b3   :  { %1481 = vmatmul.mubr.f32.vlgmr.msra.gmra.mxu1 %v1238_v6  ;;  %v1087_v52 = vmul.f32 %v1022_v46, %v1022_v46  ;;  %v1256_v35 = vsel %vm1255_vm4, %v2695_v30, %v1254_v12  ;;  %v1247_v60 = vmul.f32 %v1694_v8, %v2684_v26  ;;  %v1704_v14 = vpop.eup %1703  ;;  %vm1257_vm5 = vcmp.eq.f32.partialorder %v2695_v30, 0.0 }
 0x1b4   :  { %vm1248_vm6 = vcmp.eq.f32.partialorder %v2684_v26, inf  ;;  %vm1250_vm7 = vcmp.eq.f32.partialorder %v2684_v26, 0.0  ;;  %v1251_v31 = vand.u32 2147483648, %v2684_v26  ;;  %v1259_v55 = vsel %vm1257_vm5, %v1258_v10, %v1256_v35 }
 0x1b5   :  { %v2803_v13 = vadd.f32 %v1087_v52, %v2541_v40  ;;  %v1249_v61 = vsel %vm1248_vm6, %v2684_v26, %v1247_v60  ;;  %v1268_v62 = vmul.f32 %v1700_v56, %v2717_v45  ;;  %v1706_v28 = vpop.eup %1705  ;;  %1717 = vrsqrt.f32 %v2792_v15  ;;  %1485 = vmatprep.mubr.f32.mxu1 %v1259_v55 }
 0x1b6   :  { %v1252_v29 = vsel %vm1250_vm7, %v1251_v31, %v1249_v61  ;;  %vm1269_vm8 = vcmp.eq.f32.partialorder %v2717_v45, inf  ;;  %v1272_v30 = vand.u32 2147483648, %v2717_v45  ;;  %vm1271_vm9 = vcmp.eq.f32.partialorder %v2717_v45, 0.0 }
 0x1b7   :  { %v1708_v47 = vpop.eup %1707  ;;  %1719 = vrsqrt.f32 %v2803_v13  ;;  %1486 = vmatmul.mubr.f32.gmra.mxu1 %v1252_v29  ;;  %v1270_v40 = vsel %vm1269_vm8, %v2717_v45, %v1268_v62  ;;  %v1261_v26 = vmul.f32 %v1698_v39, %v2707_v11  ;;  %vm1262_vm10 = vcmp.eq.f32.partialorder %v2707_v11, inf }
 0x1b8   :  { %v1273_v1 = vsel %vm1271_vm9, %v1272_v30, %v1270_v40  ;;  %v1265_v16 = vand.u32 2147483648, %v2707_v11  ;;  %v1282_v34 = vmul.f32 %v1704_v14, %v2736_v32  ;;  %vm1264_vm11 = vcmp.eq.f32.partialorder %v2707_v11, 0.0 }
 0x1b9   :  { %1490 = vmatprep.mubr.f32.mxu1 %v1273_v1  ;;  %v1263_v50 = vsel %vm1262_vm10, %v2707_v11, %v1261_v26  ;;  %vm1283_vm12 = vcmp.eq.f32.partialorder %v2736_v32, inf  ;;  %v1286_v17 = vand.u32 2147483648, %v2736_v32  ;;  %vm1285_vm13 = vcmp.eq.f32.partialorder %v2736_v32, 0.0 }
 0x1ba   :  { %v1266_v27 = vsel %vm1264_vm11, %v1265_v16, %v1263_v50  ;;  %v1284_v45 = vsel %vm1283_vm12, %v2736_v32, %v1282_v34  ;;  %v1275_v22 = vmul.f32 %v1702_v7, %v2726_v37  ;;  %vm1276_vm14 = vcmp.eq.f32.partialorder %v2726_v37, inf }
 0x1bb   :  { %v1710_v44 = vpop.eup %1709  ;;  %1491 = vmatmul.mubr.f32.gmra.mxu1 %v1266_v27  ;;  %v1287_v8 = vsel %vm1285_vm13, %v1286_v17, %v1284_v45  ;;  %v1296_v58 = vmul.f32 %v1708_v47, %v2754_v19  ;;  %v1279_v25 = vand.u32 2147483648, %v2726_v37  ;;  %vm1297_vm15 = vcmp.eq.f32.partialorder %v2754_v19, inf }
 0x1bc   :  { %v1712_v53 = vpop.eup %1711  ;;  %1495 = vmatprep.mubr.f32.mxu1 %v1287_v8  ;;  %v1277_v11 = vsel %vm1276_vm14, %v2726_v37, %v1275_v22  ;;  %v1300_v9 = vand.u32 2147483648, %v2754_v19  ;;  %vm1278_vm0 = vcmp.eq.f32.partialorder %v2726_v37, 0.0  ;;  %vm1299_vm1 = vcmp.eq.f32.partialorder %v2754_v19, 0.0 }
 0x1bd   :  { %v1298_v32 = vsel %vm1297_vm15, %v2754_v19, %v1296_v58  ;;  %v1289_v57 = vmul.f32 %v1706_v28, %v2745_v21  ;;  %v1714_v2 = vpop.eup %1713  ;;  %v1280_v20 = vsel %vm1278_vm0, %v1279_v25, %v1277_v11  ;;  %vm1290_vm2 = vcmp.eq.f32.partialorder %v2745_v21, inf }
 0x1be   :  { %v1301_v23 = vsel %vm1299_vm1, %v1300_v9, %v1298_v32  ;;  %v1310_v48 = vmul.f32 %v1710_v44, %v2769_v33  ;;  %vm1311_vm3 = vcmp.eq.f32.partialorder %v2769_v33, inf  ;;  %v1314_v37 = vand.u32 2147483648, %v2769_v33 }
 0x1bf   :  { %v1716_v42 = vpop.eup %1715  ;;  %1496 = vmatmul.mubr.f32.gmra.mxu1 %v1280_v20  ;;  %v1291_v24 = vsel %vm1290_vm2, %v2745_v21, %v1289_v57  ;;  %v1293_v19 = vand.u32 2147483648, %v2745_v21  ;;  %vm1313_vm4 = vcmp.eq.f32.partialorder %v2769_v33, 0.0  ;;  %v1303_v59 = vmul.f32 %v1712_v53, %v2763_v38 }
 0x1c0   :  { %1500 = vmatprep.mubr.f32.mxu1 %v1301_v23  ;;  %v1312_v63 = vsel %vm1311_vm3, %v2769_v33, %v1310_v48  ;;  %vm1292_vm5 = vcmp.eq.f32.partialorder %v2745_v21, 0.0  ;;  %v1324_v49 = vmul.f32 %v1716_v42, %v2783_v5  ;;  %vm1304_vm6 = vcmp.eq.f32.partialorder %v2763_v38, inf }
 0x1c1   :  { %v1315_v39 = vsel %vm1313_vm4, %v1314_v37, %v1312_v63  ;;  %v1294_v54 = vsel %vm1292_vm5, %v1293_v19, %v1291_v24  ;;  %vm1325_vm7 = vcmp.eq.f32.partialorder %v2783_v5, inf  ;;  %v1305_v41 = vsel %vm1304_vm6, %v2763_v38, %v1303_v59 }
 0x1c2   :  { %v1718_v0 = vpop.eup %1717  ;;  %v1326_v51 = vsel %vm1325_vm7, %v2783_v5, %v1324_v49  ;;  %v1328_v33 = vand.u32 2147483648, %v2783_v5  ;;  %v1317_v36 = vmul.f32 %v1714_v2, %v2777_v43  ;;  %v1307_v21 = vand.u32 2147483648, %v2763_v38 }
 0x1c3   :  { %1501 = vmatmul.mubr.f32.gmra.mxu1 %v1294_v54  ;;  %vm1327_vm8 = vcmp.eq.f32.partialorder %v2783_v5, 0.0  ;;  %vm1306_vm9 = vcmp.eq.f32.partialorder %v2763_v38, 0.0  ;;  %vm1318_vm10 = vcmp.eq.f32.partialorder %v2777_v43, inf  ;;  %vm1339_vm11 = vcmp.eq.f32.partialorder %v2803_v13, inf }
 0x1c4   :  { %v1720_v56 = vpop.eup %1719  ;;  %1505 = vmatprep.mubr.f32.mxu1 %v1315_v39  ;;  %v1329_v3 = vsel %vm1327_vm8, %v1328_v33, %v1326_v51  ;;  %v1308_v18 = vsel %vm1306_vm9, %v1307_v21, %v1305_v41  ;;  %v1319_v46 = vsel %vm1318_vm10, %v2777_v43, %v1317_v36  ;;  %v1342_v7 = vand.u32 2147483648, %v2803_v13 }
 0x1c5   :  { %v1338_v4 = vmul.f32 %v1720_v56, %v2803_v13  ;;  %v1331_v6 = vmul.f32 %v1718_v0, %v2792_v15  ;;  %v1321_v38 = vand.u32 2147483648, %v2777_v43  ;;  %vm1341_vm12 = vcmp.eq.f32.partialorder %v2803_v13, 0.0 }
 0x1c6   :  { %vm1320_vm13 = vcmp.eq.f32.partialorder %v2777_v43, 0.0  ;;  %vm1332_vm14 = vcmp.eq.f32.partialorder %v2792_v15, inf  ;;  %v1335_v10 = vand.u32 2147483648, %v2792_v15  ;;  %vm1334_vm15 = vcmp.eq.f32.partialorder %v2792_v15, 0.0 }
 0x1c7   :  { %1506 = vmatmul.mubr.f32.gmra.mxu1 %v1308_v18  ;;  %v1340_v12 = vsel %vm1339_vm11, %v2803_v13, %v1338_v4  ;;  %v1322_v52 = vsel %vm1320_vm13, %v1321_v38, %v1319_v46  ;;  %v1333_v35 = vsel %vm1332_vm14, %v2792_v15, %v1331_v6 }
 0x1c8   :  { %1510 = vmatprep.mubr.f32.mxu1 %v1329_v3  ;;  %v1343_v5 = vsel %vm1341_vm12, %v1342_v7, %v1340_v12  ;;  %v1336_v60 = vsel %vm1334_vm15, %v1335_v10, %v1333_v35 }
 0x1cb   :  { %1511 = vmatmul.mubr.f32.gmra.mxu1 %v1322_v52 }
 0x1cc   :  { %1515 = vmatprep.mubr.f32.mxu1 %v1343_v5 }
 0x1cf   :  { %1516 = vmatmul.mubr.f32.gmra.mxu1 %v1336_v60 }
 0x24c   :  { %v1574_v14 = vpop.f32.mrf.mxu0 }
 0x24e   :  { %v1575_v31 = vpop.f32.mrf.mxu0 }
 0x24f   :  { %v1576_v55 = vadd.f32 %v1575_v31, %v1574_v14 }
 0x251   :  { %1521 = vst [vmem:[%s2919_s3] sm:$0xff] %v1576_v55 }
 0x253   :  { %v1577_v13 = vpop.f32.mrf.mxu0 }
 0x255   :  { %v1578_v43 = vpop.f32.mrf.mxu0 }
 0x256   :  { %v1579_v61 = vadd.f32 %v1578_v43, %v1577_v13 }
 0x257   :  { %v1580_v62 = vpop.f32.mrf.mxu0 }
 0x258   :  { %1522 = vst [vmem:[%s2919_s3 + $0x8] sm:$0xff] %v1579_v61 }
 0x259   :  { %v1581_v28 = vpop.f32.mrf.mxu0 }
 0x25a   :  { %v1582_v29 = vadd.f32 %v1581_v28, %v1580_v62 }
 0x25b   :  { %v1583_v15 = vpop.f32.mrf.mxu0 }
 0x25c   :  { %1523 = vst [vmem:[%s2919_s3 + $0x10] sm:$0xff] %v1582_v29 }
 0x25d   :  { %v1584_v30 = vpop.f32.mrf.mxu0 }
 0x25e   :  { %v1585_v47 = vadd.f32 %v1584_v30, %v1583_v15 }
 0x25f   :  { %v1586_v40 = vpop.f32.mrf.mxu0 }
 0x260   :  { %1524 = vst [vmem:[%s2919_s3 + $0x18] sm:$0xff] %v1585_v47 }
 0x261   :  { %v1587_v26 = vpop.f32.mrf.mxu0 }
 0x262   :  { %v1588_v1 = vadd.f32 %v1587_v26, %v1586_v40 }
 0x263   :  { %v1589_v16 = vpop.f32.mrf.mxu0 }
 0x264   :  { %1525 = vst [vmem:[%s2919_s3 + $0x20] sm:$0xff] %v1588_v1 }
 0x265   :  { %v1590_v34 = vpop.f32.mrf.mxu0 }
 0x266   :  { %v1591_v50 = vadd.f32 %v1590_v34, %v1589_v16 }
 0x268   :  { %1526 = vst [vmem:[%s2919_s3 + $0x28] sm:$0xff] %v1591_v50  ;;  %v1592_v17 = vpop.f32.mrf.mxu0 }
 0x26a   :  { %v1593_v27 = vpop.f32.mrf.mxu0 }
 0x26b   :  { %v1594_v45 = vadd.f32 %v1593_v27, %v1592_v17 }
 0x26d   :  { %1527 = vst [vmem:[%s2919_s3 + $0x30] sm:$0xff] %v1594_v45 }
 0x26e   :  { %v1595_v22 = vpop.f32.mrf.mxu0 }
 0x270   :  { %v1596_v44 = vpop.f32.mrf.mxu0 }
 0x271   :  { %v1597_v8 = vadd.f32 %v1596_v44, %v1595_v22 }
 0x273   :  { %1528 = vst [vmem:[%s2919_s3 + $0x38] sm:$0xff] %v1597_v8  ;;  %v1598_v58 = vpop.f32.mrf.mxu1 }
 0x275   :  { %v1599_v53 = vpop.f32.mrf.mxu1 }
 0x276   :  { %v1600_v11 = vadd.f32 %v1599_v53, %v1598_v58 }
 0x277   :  { %v1601_v25 = vpop.f32.mrf.mxu1 }
 0x278   :  { %1529 = vst [vmem:[%s2919_s3 + $0x40] sm:$0xff] %v1600_v11 }
 0x279   :  { %v1602_v9 = vpop.f32.mrf.mxu1 }
 0x27a   :  { %v1603_v32 = vadd.f32 %v1602_v9, %v1601_v25 }
 0x27b   :  { %v1604_v57 = vpop.f32.mrf.mxu1 }
 0x27c   :  { %1530 = vst [vmem:[%s2919_s3 + $0x48] sm:$0xff] %v1603_v32 }
 0x27d   :  { %v1605_v2 = vpop.f32.mrf.mxu1 }
 0x27e   :  { %v1606_v20 = vadd.f32 %v1605_v2, %v1604_v57 }
 0x27f   :  { %v1607_v23 = vpop.f32.mrf.mxu1 }
 0x280   :  { %1531 = vst [vmem:[%s2919_s3 + $0x50] sm:$0xff] %v1606_v20 }
 0x281   :  { %v1608_v48 = vpop.f32.mrf.mxu1 }
 0x282   :  { %v1609_v42 = vadd.f32 %v1608_v48, %v1607_v23 }
 0x283   :  { %v1610_v24 = vpop.f32.mrf.mxu1 }
 0x284   :  { %1532 = vst [vmem:[%s2919_s3 + $0x58] sm:$0xff] %v1609_v42 }
 0x285   :  { %v1611_v37 = vpop.f32.mrf.mxu1 }
 0x286   :  { %v1612_v19 = vadd.f32 %v1611_v37, %v1610_v24 }
 0x287   :  { %v1613_v63 = vpop.f32.mrf.mxu1 }
 0x288   :  { %1533 = vst [vmem:[%s2919_s3 + $0x60] sm:$0xff] %v1612_v19 }
 0x289   :  { %v1614_v59 = vpop.f32.mrf.mxu1 }
 0x28a   :  { %v1615_v39 = vadd.f32 %v1614_v59, %v1613_v63 }
 0x28b   :  { %v1616_v49 = vpop.f32.mrf.mxu1 }
 0x28c   :  { %1534 = vst [vmem:[%s2919_s3 + $0x68] sm:$0xff] %v1615_v39 }
 0x28d   :  { %v1617_v54 = vpop.f32.mrf.mxu1 }
 0x28e   :  { %v1618_v0 = vadd.f32 %v1617_v54, %v1616_v49 }
 0x28f   :  { %v1619_v41 = vpop.f32.mrf.mxu1 }
 0x290   :  { %1535 = vst [vmem:[%s2919_s3 + $0x70] sm:$0xff] %v1618_v0 }
 0x291   :  { %v1620_v51 = vpop.f32.mrf.mxu1 }
 0x292   :  { %v1621_v33 = vadd.f32 %v1620_v51, %v1619_v41 }
 0x294   :  { %1536 = vst [vmem:[%s2919_s3 + $0x78] sm:$0xff] %v1621_v33 }
 0x295   :  { %1541 = vsyncpa [#allocation3], 1 }

</bundles_post_ra>
